<compile_context>
chip_gen: v5e
topology: v5e:2x2
jax: 0.10.0
libtpu: 0.0.40
codegen_flags: <defaults>
</compile_context>

<pallas_src>
import jax
import jax.numpy as jnp
from jax.experimental import pallas as pl
from jax.experimental.pallas import tpu as pltpu

# ---------------------------------------------------------------------------
# Model hyper-parameters (mirroring LAENeRF.__init__ defaults)
# ---------------------------------------------------------------------------
NUM_LEVELS = 16
FEATS_PER_LEVEL = 2
IN_DIM = NUM_LEVELS * FEATS_PER_LEVEL          # 32  (hashgrid output width)
HIDDEN_DIM = 64                                # hidden_dim
NUM_PALETTE_BASES = 8                          # opt.num_palette_bases
BOUND = 1.0                                    # params.bound

FUSED_H = 2 * HIDDEN_DIM                       # 128 (weight_net | offset_net)
FUSED_OUT = 16                                 # 8 palette logits + 3 offsets + pad

TILE_M = 1024                                  # points per grid step (sweepable)


# ---------------------------------------------------------------------------
# Pallas kernel: fused weight_net + offset_net + softmax/tanh + palette blend
# ---------------------------------------------------------------------------
def laenerf_kernel(x_ref,                      # [IN_DIM, TILE_M]    bf16
                   w1_ref,                     # [FUSED_H, IN_DIM]   bf16
                   w2_ref,                     # [FUSED_H, FUSED_H]  bf16 (block-diag)
                   w3_ref,                     # [FUSED_OUT, FUSED_H] bf16
                   pal_ref,                    # [3, P]              f32
                   out_ref):                   # [3, TILE_M]         f32
    x = x_ref[...]

    # ----- fused MLP (3 bf16 MXU matmuls, f32 accumulation, ReLU in f32) -----
    h = jnp.dot(w1_ref[...], x, preferred_element_type=jnp.float32)
    h = jnp.maximum(h, 0.0).astype(jnp.bfloat16)
    h = jnp.dot(w2_ref[...], h, preferred_element_type=jnp.float32)
    h = jnp.maximum(h, 0.0).astype(jnp.bfloat16)
    y = jnp.dot(w3_ref[...], h, preferred_element_type=jnp.float32)   # [16, TM]

    w_hat = y[:NUM_PALETTE_BASES, :]                                  # [P, TM]
    o_hat = jnp.tanh(y[NUM_PALETTE_BASES:NUM_PALETTE_BASES + 3, :])   # [3, TM]

    # ----- softmax over the palette axis (sublanes), EUP approx reciprocal --
    w_max = jnp.max(w_hat, axis=0, keepdims=True)
    e = jnp.exp(w_hat - w_max)
    denom = jnp.sum(e, axis=0, keepdims=True)
    w = e * pl.reciprocal(denom, approx=True)                         # [P, TM]

    # ----- pred = softmax(w_hat) @ palette + tanh(o_hat)  (VPU broadcast-MAC)
    pal = pal_ref[...]                                                # [3, P]
    pred = o_hat
    for p in range(NUM_PALETTE_BASES):
        pred = pred + pal[:, p:p + 1] * w[p:p + 1, :]                 # [3,1]*[1,TM]
    out_ref[...] = jnp.clip(pred, 0.0, 1.0)


# ---------------------------------------------------------------------------
# Wrapper: weight fusion/packing + channel-major plumbing + pallas_call
# ---------------------------------------------------------------------------
def pack_params(raw_params):
    """Fuse the two MLPs into one 128-wide MLP (transposed, bf16) once."""
    w1w, w2w, w3w, w1o, w2o, w3o, palette = raw_params
    H, P = HIDDEN_DIM, NUM_PALETTE_BASES
    w1_t = jnp.concatenate([w1w, w1o], axis=1).T                       # [2H, IN]
    w2_t = (jnp.zeros((FUSED_H, FUSED_H), jnp.float32)
            .at[:H, :H].set(w2w.T)
            .at[H:, H:].set(w2o.T))                                    # block-diag
    w3_t = (jnp.zeros((FUSED_OUT, FUSED_H), jnp.float32)
            .at[:P, :H].set(w3w.T)
            .at[P:P + 3, H:].set(w3o.T))                               # [16, 2H]
    pal_t = palette.T                                                  # [3, P]
    return (w1_t.astype(jnp.bfloat16), w2_t.astype(jnp.bfloat16),
            w3_t.astype(jnp.bfloat16), pal_t.astype(jnp.float32))


def laenerf_forward(x_enc, packed, *, tile_m=TILE_M):
    """x_enc: [N, IN_DIM] f32 encoded points.  Returns [N, 3] f32 in [0, 1]."""
    n = x_enc.shape[0]
    w1_t, w2_t, w3_t, pal_t = packed

    # Pad N to a tile multiple and go channel-major + bf16 at the boundary.
    n_pad = pl.cdiv(n, tile_m) * tile_m
    x_t = jnp.pad(x_enc, ((0, n_pad - n), (0, 0))).T.astype(jnp.bfloat16)

    const_spec = lambda a: pl.BlockSpec(a.shape, lambda i: (0, 0))

    out_t = pl.pallas_call(
        laenerf_kernel,
        out_shape=jax.ShapeDtypeStruct((3, n_pad), jnp.float32),
        grid=(n_pad // tile_m,),
        in_specs=[
            pl.BlockSpec((IN_DIM, tile_m), lambda i: (0, i)),   # x tile (lane-dense)
            const_spec(w1_t),
            const_spec(w2_t),
            const_spec(w3_t),
            const_spec(pal_t),
        ],
        out_specs=pl.BlockSpec((3, tile_m), lambda i: (0, i)),  # lane-dense output
        compiler_params=pltpu.CompilerParams(
            dimension_semantics=("parallel",),                  # v7x megacore shard
            vmem_limit_bytes=32 * 1024 * 1024),
    )(x_t, w1_t, w2_t, w3_t, pal_t)

    return out_t.T[:n]                                          # back to [N, 3]


# ---------------------------------------------------------------------------
# Glue: deterministic parameter init + (substitute) positional encoder
# ---------------------------------------------------------------------------
def init_params(key):
    ks = jax.random.split(key, 7)
    def lin(k, fan_in, fan_out):
        scale = jnp.sqrt(2.0 / fan_in)                  # tcnn-style, no bias
        return jax.random.normal(k, (fan_in, fan_out), jnp.float32) * scale
    w1w = lin(ks[0], IN_DIM, HIDDEN_DIM)
    w2w = lin(ks[1], HIDDEN_DIM, HIDDEN_DIM)
    w3w = lin(ks[2], HIDDEN_DIM, NUM_PALETTE_BASES)
    w1o = lin(ks[3], IN_DIM, HIDDEN_DIM)
    w2o = lin(ks[4], HIDDEN_DIM, HIDDEN_DIM)
    w3o = lin(ks[5], HIDDEN_DIM, 3)
    # color_palette = th.rand((num_color_bases, 3))  -> uniform [0, 1)
    palette = jax.random.uniform(ks[6], (NUM_PALETTE_BASES, 3), jnp.float32)
    return w1w, w2w, w3w, w1o, w2o, w3o, palette


def encode(x, key):
    """Deterministic Fourier-feature stand-in for the hashgrid encoder.
    x: [N, 3] points in [-bound, bound]  ->  [N, IN_DIM] features."""
    b = jax.random.normal(key, (3, IN_DIM), jnp.float32) * 4.0
    return jnp.sin((x / BOUND) @ b).astype(jnp.float32)


def reference_forward(x_enc, raw_params):
    """Pure-JAX, un-fused, row-major reference with matching bf16 matmul
    operands (validates the weight fusion, transposition and kernel math)."""
    w1w, w2w, w3w, w1o, w2o, w3o, palette = raw_params
    bf = jnp.bfloat16
    x = x_enc.astype(bf)
    def mlp(x, w1, w2, w3):
        h = jnp.maximum(jnp.dot(x, w1.astype(bf),
                                preferred_element_type=jnp.float32), 0.0).astype(bf)
        h = jnp.maximum(jnp.dot(h, w2.astype(bf),
                                preferred_element_type=jnp.float32), 0.0).astype(bf)
        return jnp.dot(h, w3.astype(bf), preferred_element_type=jnp.float32)
    w_hat = mlp(x, w1w, w2w, w3w)
    o_hat = jnp.tanh(mlp(x, w1o, w2o, w3o))
    w = jax.nn.softmax(w_hat, axis=-1)
    return jnp.clip(w @ palette + o_hat, 0.0, 1.0)


if __name__ == "__main__":
    key = jax.random.PRNGKey(0)
    k_pts, k_enc, k_par = jax.random.split(key, 3)

    N = 2500                                          # small demo point count
    x = jax.random.uniform(k_pts, (N, 3), jnp.float32, -BOUND, BOUND)

    raw_params = init_params(k_par)
    packed = pack_params(raw_params)
    x_enc = encode(x, k_enc)                          # [N, IN_DIM]

    pred = laenerf_forward(x_enc, packed)             # [N, 3]
    pred = jax.block_until_ready(pred)

    ref = reference_forward(x_enc, raw_params)
    assert pred.shape == (N, 3)
    max_err = float(jnp.max(jnp.abs(pred - ref)))
    assert max_err < 1e-2, f"mismatch vs reference: max abs err {max_err}"

    print("KERNEL_OK")
</pallas_src>

<mosaic_0001>
module attributes {stable_mosaic.version = 11 : i64} {
  func.func @laenerf_kernel(%arg0: i32, %arg1: memref<32x1024xbf16, #tpu.memory_space<vmem>>, %arg2: memref<128x32xbf16, #tpu.memory_space<vmem>>, %arg3: memref<128x128xbf16, #tpu.memory_space<vmem>>, %arg4: memref<16x128xbf16, #tpu.memory_space<vmem>>, %arg5: memref<3x8xf32, #tpu.memory_space<vmem>>, %arg6: memref<3x1024xf32, #tpu.memory_space<vmem>>) attributes {dimension_semantics = [#tpu.dimension_semantics<parallel>], iteration_bounds = array<i64: 3>, scalar_prefetch = 0 : i64, scratch_operands = 0 : i64, tpu.core_type = #tpu.core_type<tc>, window_params = [{transform_indices = @transform_0, window_bounds = array<i64: 32, 1024>}, {pipeline_mode = #tpu.pipeline_mode<synchronous>, transform_indices = @transform_1, window_bounds = array<i64: 128, 32>}, {pipeline_mode = #tpu.pipeline_mode<synchronous>, transform_indices = @transform_2, window_bounds = array<i64: 128, 128>}, {pipeline_mode = #tpu.pipeline_mode<synchronous>, transform_indices = @transform_3, window_bounds = array<i64: 16, 128>}, {pipeline_mode = #tpu.pipeline_mode<synchronous>, transform_indices = @transform_4, window_bounds = array<i64: 3, 8>}, {transform_indices = @transform_5, window_bounds = array<i64: 3, 1024>}]} {
    %c0 = arith.constant 0 : index
    %c0_0 = arith.constant 0 : index
    %0 = vector.load %arg1[%c0, %c0_0] : memref<32x1024xbf16, #tpu.memory_space<vmem>>, vector<32x1024xbf16>
    %c0_1 = arith.constant 0 : index
    %c0_2 = arith.constant 0 : index
    %1 = vector.load %arg2[%c0_1, %c0_2] : memref<128x32xbf16, #tpu.memory_space<vmem>>, vector<128x32xbf16>
    %cst = arith.constant dense<0.000000e+00> : vector<128x1024xf32>
    %2 = tpu.matmul %1, %0, %cst {dimension_numbers = #tpu.dot_dimension_numbers<[1], [0], [0], [1], [0, 0, 1, 1], [], []>} : vector<128x32xbf16>, vector<32x1024xbf16>, vector<128x1024xf32> -> vector<128x1024xf32>
    %cst_3 = arith.constant 0.000000e+00 : f32
    %3 = vector.broadcast %cst_3 : f32 to vector<128x1024xf32>
    %4 = arith.maximumf %2, %3 : vector<128x1024xf32>
    %5 = arith.truncf %4 : vector<128x1024xf32> to vector<128x1024xbf16>
    %c0_4 = arith.constant 0 : index
    %c0_5 = arith.constant 0 : index
    %6 = vector.load %arg3[%c0_4, %c0_5] : memref<128x128xbf16, #tpu.memory_space<vmem>>, vector<128x128xbf16>
    %cst_6 = arith.constant dense<0.000000e+00> : vector<128x1024xf32>
    %7 = tpu.matmul %6, %5, %cst_6 {dimension_numbers = #tpu.dot_dimension_numbers<[1], [0], [0], [1], [0, 0, 1, 1], [], []>} : vector<128x128xbf16>, vector<128x1024xbf16>, vector<128x1024xf32> -> vector<128x1024xf32>
    %cst_7 = arith.constant 0.000000e+00 : f32
    %8 = vector.broadcast %cst_7 : f32 to vector<128x1024xf32>
    %9 = arith.maximumf %7, %8 : vector<128x1024xf32>
    %10 = arith.truncf %9 : vector<128x1024xf32> to vector<128x1024xbf16>
    %c0_8 = arith.constant 0 : index
    %c0_9 = arith.constant 0 : index
    %11 = vector.load %arg4[%c0_8, %c0_9] : memref<16x128xbf16, #tpu.memory_space<vmem>>, vector<16x128xbf16>
    %cst_10 = arith.constant dense<0.000000e+00> : vector<16x1024xf32>
    %12 = tpu.matmul %11, %10, %cst_10 {dimension_numbers = #tpu.dot_dimension_numbers<[1], [0], [0], [1], [0, 0, 1, 1], [], []>} : vector<16x128xbf16>, vector<128x1024xbf16>, vector<16x1024xf32> -> vector<16x1024xf32>
    %13 = vector.extract_strided_slice %12 {offsets = [0, 0], sizes = [8, 1024], strides = [1, 1]} : vector<16x1024xf32> to vector<8x1024xf32>
    %14 = vector.extract_strided_slice %12 {offsets = [8, 0], sizes = [3, 1024], strides = [1, 1]} : vector<16x1024xf32> to vector<3x1024xf32>
    %15 = math.tanh %14 : vector<3x1024xf32>
    %cst_11 = arith.constant dense<0xFF800000> : vector<1024xf32>
    %16 = vector.multi_reduction <maximumf>, %13, %cst_11 [0] : vector<8x1024xf32> to vector<1024xf32>
    %17 = vector.shape_cast %16 : vector<1024xf32> to vector<1x1024xf32>
    %18 = vector.broadcast %17 : vector<1x1024xf32> to vector<8x1024xf32>
    %19 = arith.subf %13, %18 : vector<8x1024xf32>
    %20 = math.exp %19 : vector<8x1024xf32>
    %cst_12 = arith.constant dense<0.000000e+00> : vector<1024xf32>
    %21 = vector.multi_reduction <add>, %20, %cst_12 [0] : vector<8x1024xf32> to vector<1024xf32>
    %22 = vector.shape_cast %21 : vector<1024xf32> to vector<1x1024xf32>
    %23 = tpu.reciprocal %22 {approx = true} : vector<1x1024xf32> -> vector<1x1024xf32>
    %24 = vector.broadcast %23 : vector<1x1024xf32> to vector<8x1024xf32>
    %25 = arith.mulf %20, %24 : vector<8x1024xf32>
    %c0_13 = arith.constant 0 : index
    %c0_14 = arith.constant 0 : index
    %26 = vector.load %arg5[%c0_13, %c0_14] : memref<3x8xf32, #tpu.memory_space<vmem>>, vector<3x8xf32>
    %27 = vector.extract_strided_slice %26 {offsets = [0, 0], sizes = [3, 1], strides = [1, 1]} : vector<3x8xf32> to vector<3x1xf32>
    %28 = vector.extract_strided_slice %25 {offsets = [0, 0], sizes = [1, 1024], strides = [1, 1]} : vector<8x1024xf32> to vector<1x1024xf32>
    %29 = vector.broadcast %27 : vector<3x1xf32> to vector<3x1024xf32>
    %30 = vector.broadcast %28 : vector<1x1024xf32> to vector<3x1024xf32>
    %31 = arith.mulf %29, %30 : vector<3x1024xf32>
    %32 = arith.addf %15, %31 : vector<3x1024xf32>
    %33 = vector.extract_strided_slice %26 {offsets = [0, 1], sizes = [3, 1], strides = [1, 1]} : vector<3x8xf32> to vector<3x1xf32>
    %34 = vector.extract_strided_slice %25 {offsets = [1, 0], sizes = [1, 1024], strides = [1, 1]} : vector<8x1024xf32> to vector<1x1024xf32>
    %35 = vector.broadcast %33 : vector<3x1xf32> to vector<3x1024xf32>
    %36 = vector.broadcast %34 : vector<1x1024xf32> to vector<3x1024xf32>
    %37 = arith.mulf %35, %36 : vector<3x1024xf32>
    %38 = arith.addf %32, %37 : vector<3x1024xf32>
    %39 = vector.extract_strided_slice %26 {offsets = [0, 2], sizes = [3, 1], strides = [1, 1]} : vector<3x8xf32> to vector<3x1xf32>
    %40 = vector.extract_strided_slice %25 {offsets = [2, 0], sizes = [1, 1024], strides = [1, 1]} : vector<8x1024xf32> to vector<1x1024xf32>
    %41 = vector.broadcast %39 : vector<3x1xf32> to vector<3x1024xf32>
    %42 = vector.broadcast %40 : vector<1x1024xf32> to vector<3x1024xf32>
    %43 = arith.mulf %41, %42 : vector<3x1024xf32>
    %44 = arith.addf %38, %43 : vector<3x1024xf32>
    %45 = vector.extract_strided_slice %26 {offsets = [0, 3], sizes = [3, 1], strides = [1, 1]} : vector<3x8xf32> to vector<3x1xf32>
    %46 = vector.extract_strided_slice %25 {offsets = [3, 0], sizes = [1, 1024], strides = [1, 1]} : vector<8x1024xf32> to vector<1x1024xf32>
    %47 = vector.broadcast %45 : vector<3x1xf32> to vector<3x1024xf32>
    %48 = vector.broadcast %46 : vector<1x1024xf32> to vector<3x1024xf32>
    %49 = arith.mulf %47, %48 : vector<3x1024xf32>
    %50 = arith.addf %44, %49 : vector<3x1024xf32>
    %51 = vector.extract_strided_slice %26 {offsets = [0, 4], sizes = [3, 1], strides = [1, 1]} : vector<3x8xf32> to vector<3x1xf32>
    %52 = vector.extract_strided_slice %25 {offsets = [4, 0], sizes = [1, 1024], strides = [1, 1]} : vector<8x1024xf32> to vector<1x1024xf32>
    %53 = vector.broadcast %51 : vector<3x1xf32> to vector<3x1024xf32>
    %54 = vector.broadcast %52 : vector<1x1024xf32> to vector<3x1024xf32>
    %55 = arith.mulf %53, %54 : vector<3x1024xf32>
    %56 = arith.addf %50, %55 : vector<3x1024xf32>
    %57 = vector.extract_strided_slice %26 {offsets = [0, 5], sizes = [3, 1], strides = [1, 1]} : vector<3x8xf32> to vector<3x1xf32>
    %58 = vector.extract_strided_slice %25 {offsets = [5, 0], sizes = [1, 1024], strides = [1, 1]} : vector<8x1024xf32> to vector<1x1024xf32>
    %59 = vector.broadcast %57 : vector<3x1xf32> to vector<3x1024xf32>
    %60 = vector.broadcast %58 : vector<1x1024xf32> to vector<3x1024xf32>
    %61 = arith.mulf %59, %60 : vector<3x1024xf32>
    %62 = arith.addf %56, %61 : vector<3x1024xf32>
    %63 = vector.extract_strided_slice %26 {offsets = [0, 6], sizes = [3, 1], strides = [1, 1]} : vector<3x8xf32> to vector<3x1xf32>
    %64 = vector.extract_strided_slice %25 {offsets = [6, 0], sizes = [1, 1024], strides = [1, 1]} : vector<8x1024xf32> to vector<1x1024xf32>
    %65 = vector.broadcast %63 : vector<3x1xf32> to vector<3x1024xf32>
    %66 = vector.broadcast %64 : vector<1x1024xf32> to vector<3x1024xf32>
    %67 = arith.mulf %65, %66 : vector<3x1024xf32>
    %68 = arith.addf %62, %67 : vector<3x1024xf32>
    %69 = vector.extract_strided_slice %26 {offsets = [0, 7], sizes = [3, 1], strides = [1, 1]} : vector<3x8xf32> to vector<3x1xf32>
    %70 = vector.extract_strided_slice %25 {offsets = [7, 0], sizes = [1, 1024], strides = [1, 1]} : vector<8x1024xf32> to vector<1x1024xf32>
    %71 = vector.broadcast %69 : vector<3x1xf32> to vector<3x1024xf32>
    %72 = vector.broadcast %70 : vector<1x1024xf32> to vector<3x1024xf32>
    %73 = arith.mulf %71, %72 : vector<3x1024xf32>
    %74 = arith.addf %68, %73 : vector<3x1024xf32>
    %cst_15 = arith.constant 0.000000e+00 : f32
    %cst_16 = arith.constant 1.000000e+00 : f32
    %75 = vector.broadcast %cst_15 : f32 to vector<3x1024xf32>
    %76 = arith.maximumf %75, %74 : vector<3x1024xf32>
    %77 = vector.broadcast %cst_16 : f32 to vector<3x1024xf32>
    %78 = arith.minimumf %77, %76 : vector<3x1024xf32>
    %c0_17 = arith.constant 0 : index
    %c0_18 = arith.constant 0 : index
    %79 = vector.load %arg6[%c0_17, %c0_18] : memref<3x1024xf32, #tpu.memory_space<vmem>>, vector<3x1024xf32>
    tpu.vector_store %arg6[%c0_17, %c0_18], %78 {strides = array<i32>} : memref<3x1024xf32, #tpu.memory_space<vmem>>, vector<3x1024xf32>,
    return
  }
  func.func @transform_0(%arg0: i32) -> (i32, i32) {
    %c0_i32 = arith.constant 0 : i32
    %c0_i32_0 = arith.constant 0 : i32
    return %c0_i32, %arg0 : i32, i32
  }
  func.func @transform_1(%arg0: i32) -> (i32, i32) {
    %c0_i32 = arith.constant 0 : i32
    %c0_i32_0 = arith.constant 0 : i32
    %c0_i32_1 = arith.constant 0 : i32
    return %c0_i32, %c0_i32_0 : i32, i32
  }
  func.func @transform_2(%arg0: i32) -> (i32, i32) {
    %c0_i32 = arith.constant 0 : i32
    %c0_i32_0 = arith.constant 0 : i32
    %c0_i32_1 = arith.constant 0 : i32
    return %c0_i32, %c0_i32_0 : i32, i32
  }
  func.func @transform_3(%arg0: i32) -> (i32, i32) {
    %c0_i32 = arith.constant 0 : i32
    %c0_i32_0 = arith.constant 0 : i32
    %c0_i32_1 = arith.constant 0 : i32
    return %c0_i32, %c0_i32_0 : i32, i32
  }
  func.func @transform_4(%arg0: i32) -> (i32, i32) {
    %c0_i32 = arith.constant 0 : i32
    %c0_i32_0 = arith.constant 0 : i32
    %c0_i32_1 = arith.constant 0 : i32
    return %c0_i32, %c0_i32_0 : i32, i32
  }
  func.func @transform_5(%arg0: i32) -> (i32, i32) {
    %c0_i32 = arith.constant 0 : i32
    %c0_i32_0 = arith.constant 0 : i32
    return %c0_i32, %arg0 : i32, i32
  }
}

</mosaic_0001>

<bundles_post_ra>
// kernel: tpu_custom_call.1
= control target key start
LH: loop header
LB: loop body
LE: loop exit
PB: predicated region body
PF: predicated region fallthrough
CT: control target
= control target key end

     0   :  { %10 = vsyncpa [#allocation3], 0  ;;  %s3838_s0 = inlined_call_operand.hbm [shape: bf16[32,3072], index: 0, kind: input, shape index: {}]   ;;  %s3839_s1 = inlined_call_operand.vmem [shape: bf16[128,32], index: 1, kind: input, shape index: {}]   ;;  %s3840_s2 = inlined_call_operand.vmem [shape: bf16[128,128], index: 2, kind: input, shape index: {}]   ;;  %s3841_s3 = inlined_call_operand.vmem [shape: bf16[16,128], index: 3, kind: input, shape index: {}]   ;;  %s3842_s4 = inlined_call_operand.vmem [shape: f32[3,8], index: 4, kind: input, shape index: {}]   ;;  %s3843_s5 = inlined_call_operand.hbm [shape: f32[3,3072], index: 5, kind: output, shape index: {}]  }
   0x1   :  { %12 = vsyncpa [#allocation3 + $0x1], 0 }
   0x2   :  { %13 = vsyncpa [#allocation4], 0 }
   0x3   :  { %15 = vsyncpa [#allocation4 + $0x1], 0  ;;  %s2773_s18 = smov 0   ;;  %s2775_s19 = smov 0  }
   0x4   :  { %s2777_s20 = smov 0   ;;  %s2779_s21 = smov 0  }
   0x5 LB: > { %s2794_s22 = sadd.s32 4294967295, %s2730_s21   ;;  %s2275_s23 = sadd.s32 4294967294, %s2730_s21   ;;  %s2730_s21 = sphi %s2779_s21, %s3898_s21   ;;  %s2726_s20 = sphi %s2777_s20, %s3897_s20   ;;  %s2722_s19 = sphi %s2775_s19, %s3896_s19   ;;  %s2718_s18 = sphi %s2773_s18, %s3895_s18  }
   0x6   : > { %s2798_s24 = sadd.s32 1, %s2730_s21   ;;  %s28_s25 = sadd.s32 1, %s2726_s20 }
   0x7   : > { %s25_s26 = ssub.s32 %s2730_s21, %s2798_s24  ;;  %p35_p0 = scmp.ne.s32.totalorder %s2726_s20, %s2722_s19 }
   0x8   : > { %p26_p1 = scmp.eq.s32.totalorder %s25_s26, 0  ;;  %p36_p2 = scmp.eq.s32.totalorder %s2730_s21, 0 }
   0x9   : > { %p41_p3 = scmp.ne.s32.totalorder %s2722_s19, %s2718_s18  ;;  %p42_p4 = scmp.eq.s32.totalorder %s2794_s22, 0 }
   0xa   : > { %s2810_s27 = scalar_select %p26_p1, %s2726_s20, %s28_s25  }
   0xb   : > { %p2812_p5 = por %p36_p2, %p35_p0  ;;  %p2816_p6 = por %p42_p4, %p41_p3 }
   0xc   : > { %p149_p7 = scmp.eq.s32.totalorder %s2794_s22, 2  ;;  %p155_p8 = scmp.eq.s32.totalorder %s2275_s23, 2 }
   0xd   : > { %p2532_p9 = scmp.lt.s32.totalorder %s2730_s21, 3  ;;  %s187_s7 = sand.u32 1, %s2726_s20  }
   0xe   : > { %p2822_p10 = por %p149_p7, %p35_p0  ;;  %p2826_p11 = por %p155_p8, %p41_p3 }
   0xf   : > { %s2485_s8 = sshll.u32 %s2730_s21, 5  ;;  %s2278_s9 = sshll.u32 %s187_s7, 7 }
  0x10   : > { %s196_s12 = scalar_lea.hbm %s3838_s0, %s2485_s8  ;;  %s191_s14 = scalar_lea.vmem [#allocation2], %s2278_s9 }
  0x11   : > { %s197_s13 = sshll.u32 %s196_s12, 4  ;;  %s199_s15 = sshll.u32 %s191_s14, 4  ;;  %s198_s13 = int_to_ptr.hbm [resolvable:$true] %s197_s13  ;;  %s200_s15 = int_to_ptr.vmem [resolvable:$true] %s199_s15 }
  0x12   : > { %p2837_p12 = pnand %p2532_p9, %p2812_p5  ;;  %p2281_p13 = scmp.ge.s32.totalorder %s2730_s21, 1 }
  0x13   : > { %s188_s17 = scalar_lea.sflag [#allocation3], %s187_s7  ;;  %s2634_s23 = sshra.s32 %s198_s13, 4  ;;  %s2635_s23 = int_to_ptr.hbm [resolvable:$true] %s2634_s23 }
  0x14   : > { %s2636_s25 = scalar_lea.hbm %s2635_s23, 128  ;;  %p2638_p1 = pneg %p2837_p12 }
  0x15   : > { %p2637_p0 = scmp.ne.s32.totalorder %s2635_s23, %s2636_s25  ;;  %s2641_s9 = scalar_lea.hbm %s3838_s0, 384 }
  0x16   : > { %p2642_p4 = scmp.lt.s32.totalorder %s2635_s23, %s3838_s0  ;;  %p2643_p5 = scmp.lt.s32.totalorder %s2641_s9, %s2636_s25 }
  0x17   : > { %p2639_p2 = pnand %p2638_p1, %p2637_p0 }
  0x18   : > { %p2644_p7 = por %p2643_p5, %p2642_p4 }
  0x19   : > { %p2640_p3 = pneg %p2639_p2 }
  0x1b   : > { %p2645_p8 = pnand %p2644_p7, %p2640_p3 }
  0x1d   : > { %2648 = shalt.err (!%p2645_p8)
}
  0x1e   : > { %s2732_s7 = smov 1536   ;;  %s2733_s11 = smov 512  }
  0x1f   : > { %s2734_s12 = smov 32   ;;  %p207_p9 = scmp.lt.s32.totalorder %s2730_s21, 4 }
  0x20   : > { %2527 = dma.hbm_to_vmem [thread:$0]  (!%p2837_p12), %s198_s13, 2048, %s200_s15, %s188_s17, %s2732_s7, %s2733_s11, %s2734_s12  }
  0x21   : > { %p208_p0 = pnand %p2281_p13, %p207_p9 }
  0x23   : > { %211 = sbr.rel (%p208_p0) target bundleno = 965 (0x3c5), region = 40 }
  0x28   : > { %s2856_s14 = sand.u32 1, %s2722_s19  }
  0x29   : > { %s2282_s23 = sshll.u32 %s2856_s14, 7  ;;  %s214_s25 = scalar_lea.sflag [#allocation3], %s2856_s14 }
  0x2a   : > { %s2860_s26 = scalar_lea.vmem [#allocation2], %s2282_s23 }
  0x2b   : > { %2709 = dma.done.wait (%p2816_p6), %s214_s25, 2048  }
  0x2c   : > { %2711 = vsyncadd (%p2816_p6), %s214_s25, 4294965248  ;;  %v2350_v0 = vld [vmem:[%s2860_s26 + $0x40] sm:$0xf]  ;;  %v2494_v2 = vld [vmem:[%s2860_s26 + $0x44] sm:$0xf]  ;;  %vm400_vm0 = vcmask 261120  }
  0x2d   : > { %v2498_v1 = vld [vmem:[%s2860_s26 + $0x5c] sm:$0xf0]  ;;  %v2352_v4 = vld [vmem:[%s2860_s26 + $0x60] sm:$0xf0]  ;;  %v2358_v5 = vld [vmem:[%s2860_s26 + $0x48] sm:$0xf] }
  0x2e   : > { %v2351_v3 = vor.u32 %v2498_v1, %v2350_v0  ;;  %v2499_v6 = vld [vmem:[%s2860_s26 + $0x64] sm:$0xf0]  ;;  %v2355_v7 = vor.u32 %v2494_v2, %v2352_v4  ;;  %v2495_v9 = vld [vmem:[%s2860_s26 + $0x4c] sm:$0xf]  ;;  %v2318_v11 = vld [vmem:[%s2860_s26] sm:$0xf] }
  0x2f   : > { %v2359_v8 = vor.u32 %v2499_v6, %v2358_v5  ;;  %v2360_v10 = vld [vmem:[%s2860_s26 + $0x68] sm:$0xf0]  ;;  %v2490_v13 = vld [vmem:[%s2860_s26 + $0x1c] sm:$0xf0]  ;;  %v2486_v14 = vld [vmem:[%s2860_s26 + $0x4] sm:$0xf] }
  0x30   : > { %431 = vmatpush.bf16.msra.mxu0 %v2351_v3  ;;  %v2363_v12 = vor.u32 %v2495_v9, %v2360_v10  ;;  %v2320_v15 = vld [vmem:[%s2860_s26 + $0x20] sm:$0xf0]  ;;  %480 = vmatpush.bf16.msra.mxu1 %v2355_v7  ;;  %v2319_v16 = vor.u32 %v2490_v13, %v2318_v11  ;;  %v2326_v18 = vld [vmem:[%s2860_s26 + $0x8] sm:$0xf]  ;;  %v2487_v20 = vld [vmem:[%s2860_s26 + $0xc] sm:$0xf] }
  0x31   : > { %529 = vmatpush.bf16.msra.mxu2 %v2359_v8  ;;  %v2323_v17 = vor.u32 %v2486_v14, %v2320_v15  ;;  %v2491_v19 = vld [vmem:[%s2860_s26 + $0x24] sm:$0xf0]  ;;  %v2328_v22 = vld [vmem:[%s2860_s26 + $0x28] sm:$0xf0]  ;;  %v2885_v24 = vld [vmem:[%s3839_s1] sm:$0xff]  ;;  %s2283_s9 = sshll.u32 %s2856_s14, 5 }
  0x32   : > { %578 = vmatpush.bf16.msra.mxu3 %v2363_v12  ;;  %v2327_v21 = vor.u32 %v2491_v19, %v2326_v18  ;;  %v2331_v23 = vor.u32 %v2487_v20, %v2328_v22  ;;  %v2898_v25 = vld [vmem:[%s3839_s1 + $0x8] sm:$0xff]  ;;  %v2911_v26 = vld [vmem:[%s3839_s1 + $0x10] sm:$0xff]  ;;  %v2924_v27 = vld [vmem:[%s3839_s1 + $0x18] sm:$0xff]  ;;  %vm2175_vm1 = vcmask 1043456   ;;  %s3725_s28 = scalar_lea.vmem [#allocation5], %s2283_s9  ;;  %s2519_s10 = sshll.u32 %s2794_s22, 5 }
  0x33   : > { %v2937_v28 = vld [vmem:[%s3839_s1 + $0x20] sm:$0xff]  ;;  %v2497_v29 = vld [vmem:[%s2860_s26 + $0x5c] sm:$0xf]  ;;  %v2374_v31 = vld [vmem:[%s2860_s26 + $0x58] sm:$0xf]  ;;  %s2200_s12 = scalar_lea.hbm %s3843_s5, %s2519_s10  ;;  %s2202_s23 = sshll.u32 %s3725_s28, 4  ;;  %s2203_s23 = int_to_ptr.vmem [resolvable:$true] %s2202_s23 }
  0x34   : > { %432 = vmatpush.bf16.msra.mxu0 %v2319_v16  ;;  %481 = vmatpush.bf16.msra.mxu1 %v2323_v17  ;;  %v2376_v30 = vld [vmem:[%s2860_s26 + $0x78] sm:$0xf0]  ;;  %v2501_v33 = vld [vmem:[%s2860_s26 + $0x74] sm:$0xf0]  ;;  %v2954_v35 = vld [vmem:[%s3839_s1 + $0x28] sm:$0xff]  ;;  %s2204_s22 = sshll.u32 %s2200_s12, 4  ;;  %s2205_s22 = int_to_ptr.hbm [resolvable:$true] %s2204_s22 }
  0x35   : > { %530 = vmatpush.bf16.msra.mxu2 %v2327_v21  ;;  %v2379_v32 = vor.u32 %v2497_v29, %v2376_v30  ;;  %v2375_v34 = vor.u32 %v2501_v33, %v2374_v31  ;;  %v2496_v36 = vld [vmem:[%s2860_s26 + $0x54] sm:$0xf]  ;;  %v2366_v38 = vld [vmem:[%s2860_s26 + $0x50] sm:$0xf]  ;;  %v2342_v48 = vld [vmem:[%s2860_s26 + $0x18] sm:$0xf] }
  0x36   : > { %579 = vmatpush.bf16.msra.mxu3 %v2331_v23  ;;  %v2368_v37 = vld [vmem:[%s2860_s26 + $0x70] sm:$0xf0]  ;;  %v2500_v40 = vld [vmem:[%s2860_s26 + $0x6c] sm:$0xf0]  ;;  %v2493_v49 = vld [vmem:[%s2860_s26 + $0x34] sm:$0xf0] }
  0x37   : > { %2380 = vmatmul.msk.bf16.vlgmr.msra.gmra.mxu0 %vm400_vm0, %v2885_v24  ;;  %2388 = vmatmul.msk.bf16.vlgmr.msra.gmra.mxu1 %vm400_vm0, %v2885_v24  ;;  %v2371_v39 = vor.u32 %v2496_v36, %v2368_v37  ;;  %v2367_v41 = vor.u32 %v2500_v40, %v2366_v38  ;;  %v2971_v42 = vld [vmem:[%s3839_s1 + $0x30] sm:$0xff]  ;;  %v2343_v51 = vor.u32 %v2493_v49, %v2342_v48  ;;  %v2489_v52 = vld [vmem:[%s2860_s26 + $0x1c] sm:$0xf]  ;;  %s2189_s25 = scalar_lea.sflag [#allocation4], %s2856_s14  ;;  %s2678_s29 = sshra.s32 %s2205_s22, 4  ;;  %s2679_s29 = int_to_ptr.hbm [resolvable:$true] %s2678_s29 }
  0x38   : > { %2396 = vmatmul.msk.bf16.vlgmr.msra.gmra.mxu2 %vm400_vm0, %v2885_v24  ;;  %v2334_v43 = vld [vmem:[%s2860_s26 + $0x10] sm:$0xf]  ;;  %v2488_v45 = vld [vmem:[%s2860_s26 + $0x14] sm:$0xf]  ;;  %v2344_v53 = vld [vmem:[%s2860_s26 + $0x38] sm:$0xf0]  ;;  %p2685_p1 = scmp.lt.s32.totalorder %s2679_s29, %s3843_s5 }
  0x39   : > { %2404 = vmatmul.msk.bf16.vlgmr.msra.gmra.mxu3 %vm400_vm0, %v2885_v24  ;;  %725 = vmatpush.bf16.msrb.mxu2 %v2375_v34  ;;  %v2492_v44 = vld [vmem:[%s2860_s26 + $0x2c] sm:$0xf0]  ;;  %v2336_v47 = vld [vmem:[%s2860_s26 + $0x30] sm:$0xf0]  ;;  %v2347_v54 = vor.u32 %v2489_v52, %v2344_v53  ;;  %v2992_v55 = vld [vmem:[%s3839_s1 + $0x38] sm:$0xff]  ;;  %s2680_s13 = scalar_lea.hbm %s2679_s29, 32 }
  0x3a   : > { %774 = vmatpush.bf16.msrb.mxu3 %v2379_v32  ;;  %676 = vmatpush.bf16.msrb.mxu1 %v2371_v39  ;;  %v2335_v46 = vor.u32 %v2492_v44, %v2334_v43  ;;  %v2339_v50 = vor.u32 %v2488_v45, %v2336_v47  ;;  %p2681_p6 = scmp.ne.s32.totalorder %s2679_s29, %s2680_s13  ;;  %s2684_s16 = scalar_lea.hbm %s3843_s5, 96 }
  0x3b   : > { %627 = vmatpush.bf16.msrb.mxu0 %v2367_v41  ;;  %p2686_p2 = scmp.lt.s32.totalorder %s2684_s16, %s2680_s13 }
  0x3c   : > { %p2682_p12 = pnand %p2681_p6, %p2822_p10 }
  0x3d   : > { %726 = vmatpush.bf16.msrb.mxu2 %v2343_v51  ;;  %p2687_p3 = por %p2686_p2, %p2685_p1 }
  0x3e   : > { %677 = vmatpush.bf16.msrb.mxu1 %v2339_v50  ;;  %775 = vmatpush.bf16.msrb.mxu3 %v2347_v54  ;;  %p2683_p13 = pneg %p2682_p12 }
  0x3f   : > { %628 = vmatpush.bf16.msrb.mxu0 %v2335_v46 }
  0x40   : > { %p2688_p4 = pnand %p2687_p3, %p2683_p13 }
  0x47   : > { %2381 = vmatmul.msk.bf16.gmra.mxu0 %vm400_vm0, %v2898_v25  ;;  %2389 = vmatmul.msk.bf16.gmra.mxu1 %vm400_vm0, %v2898_v25 }
  0x48   : > { %2397 = vmatmul.msk.bf16.gmra.mxu2 %vm400_vm0, %v2898_v25 }
  0x49   : > { %2405 = vmatmul.msk.bf16.gmra.mxu3 %vm400_vm0, %v2898_v25 }
  0x57   : > { %2382 = vmatmul.msk.bf16.gmra.mxu0 %vm400_vm0, %v2911_v26  ;;  %2390 = vmatmul.msk.bf16.gmra.mxu1 %vm400_vm0, %v2911_v26 }
  0x58   : > { %2398 = vmatmul.msk.bf16.gmra.mxu2 %vm400_vm0, %v2911_v26 }
  0x59   : > { %2406 = vmatmul.msk.bf16.gmra.mxu3 %vm400_vm0, %v2911_v26 }
  0x67   : > { %2383 = vmatmul.msk.bf16.gmra.mxu0 %vm400_vm0, %v2924_v27  ;;  %2391 = vmatmul.msk.bf16.gmra.mxu1 %vm400_vm0, %v2924_v27 }
  0x68   : > { %2399 = vmatmul.msk.bf16.gmra.mxu2 %vm400_vm0, %v2924_v27 }
  0x69   : > { %2407 = vmatmul.msk.bf16.gmra.mxu3 %vm400_vm0, %v2924_v27 }
  0x77   : > { %2384 = vmatmul.msk.bf16.gmra.mxu0 %vm400_vm0, %v2937_v28  ;;  %2392 = vmatmul.msk.bf16.gmra.mxu1 %vm400_vm0, %v2937_v28 }
  0x78   : > { %2400 = vmatmul.msk.bf16.gmra.mxu2 %vm400_vm0, %v2937_v28 }
  0x79   : > { %2408 = vmatmul.msk.bf16.gmra.mxu3 %vm400_vm0, %v2937_v28 }
  0x87   : > { %2385 = vmatmul.msk.bf16.gmra.mxu0 %vm400_vm0, %v2954_v35  ;;  %2393 = vmatmul.msk.bf16.gmra.mxu1 %vm400_vm0, %v2954_v35 }
  0x88   : > { %2401 = vmatmul.msk.bf16.gmra.mxu2 %vm400_vm0, %v2954_v35 }
  0x89   : > { %2409 = vmatmul.msk.bf16.gmra.mxu3 %vm400_vm0, %v2954_v35 }
  0x97   : > { %2386 = vmatmul.msk.bf16.gmra.mxu0 %vm400_vm0, %v2971_v42  ;;  %2394 = vmatmul.msk.bf16.gmra.mxu1 %vm400_vm0, %v2971_v42 }
  0x98   : > { %2402 = vmatmul.msk.bf16.gmra.mxu2 %vm400_vm0, %v2971_v42 }
  0x99   : > { %2410 = vmatmul.msk.bf16.gmra.mxu3 %vm400_vm0, %v2971_v42 }
  0xa7   : > { %2387 = vmatmul.msk.bf16.gmra.mxu0 %vm400_vm0, %v2992_v55  ;;  %2395 = vmatmul.msk.bf16.gmra.mxu1 %vm400_vm0, %v2992_v55 }
  0xa8   : > { %2403 = vmatmul.msk.bf16.gmra.mxu2 %vm400_vm0, %v2992_v55 }
  0xa9   : > { %2411 = vmatmul.msk.bf16.gmra.mxu3 %vm400_vm0, %v2992_v55 }
  0xb4   : > { %v434_v56 = vpop.f32.mrf.mxu0  ;;  %v483_v57 = vpop.f32.mrf.mxu1 }
  0xb5   : > { %v817_v58 = vmax.f32 %v434_v56, 0.0  ;;  %v818_v60 = vmax.f32 %v483_v57, 0.0 }
  0xb7   : > { %2412 = vmatmul.msk.bf16.vlgmr.msrb.gmra.mxu0 %vm400_vm0, %v2885_v24  ;;  %2420 = vmatmul.msk.bf16.vlgmr.msrb.gmra.mxu1 %vm400_vm0, %v2885_v24 }
  0xb8   : > { %2428 = vmatmul.msk.bf16.vlgmr.msrb.gmra.mxu2 %vm400_vm0, %v2885_v24 }
  0xb9   : > { %2436 = vmatmul.msk.bf16.vlgmr.msrb.gmra.mxu3 %vm400_vm0, %v2885_v24 }
  0xbb   : > { %v532_v59 = vpop.f32.mrf.mxu2 }
  0xbc   : > { %v581_v61 = vpop.f32.mrf.mxu3  ;;  %v436_v62 = vpop.f32.mrf.mxu0  ;;  %v819_v5 = vmax.f32 %v532_v59, 0.0 }
  0xbd   : > { %v825_v63 = vmax.f32 %v436_v62, 0.0  ;;  %v485_v0 = vpop.f32.mrf.mxu1  ;;  %v820_v9 = vmax.f32 %v581_v61, 0.0 }
  0xbe   : > { %v826_v1 = vmax.f32 %v485_v0, 0.0 }
  0xbf   : > { %v3010_v2 = vpack.c.bf16 %v825_v63, %v817_v58 }
  0xc0   : > { %v3012_v3 = vpack.c.bf16 %v826_v1, %v818_v60 }
  0xc3   : > { %v534_v4 = vpop.f32.mrf.mxu2 }
  0xc4   : > { %v827_v6 = vmax.f32 %v534_v4, 0.0  ;;  %v583_v7 = vpop.f32.mrf.mxu3  ;;  %v439_v8 = vpop.f32.mrf.mxu0 }
  0xc5   : > { %v828_v10 = vmax.f32 %v583_v7, 0.0  ;;  %v488_v11 = vpop.f32.mrf.mxu1  ;;  %v833_v14 = vmax.f32 %v439_v8, 0.0 }
  0xc6   : > { %v3014_v12 = vpack.c.bf16 %v827_v6, %v819_v5  ;;  %v834_v16 = vmax.f32 %v488_v11, 0.0 }
  0xc7   : > { %v3016_v13 = vpack.c.bf16 %v828_v10, %v820_v9  ;;  %2413 = vmatmul.msk.bf16.gmra.mxu0 %vm400_vm0, %v2898_v25  ;;  %2421 = vmatmul.msk.bf16.gmra.mxu1 %vm400_vm0, %v2898_v25 }
  0xc8   : > { %2429 = vmatmul.msk.bf16.gmra.mxu2 %vm400_vm0, %v2898_v25 }
  0xc9   : > { %2437 = vmatmul.msk.bf16.gmra.mxu3 %vm400_vm0, %v2898_v25 }
  0xcb   : > { %v537_v15 = vpop.f32.mrf.mxu2 }
  0xcc   : > { %v586_v17 = vpop.f32.mrf.mxu3  ;;  %v441_v18 = vpop.f32.mrf.mxu0  ;;  %v835_v29 = vmax.f32 %v537_v15, 0.0 }
  0xcd   : > { %v841_v19 = vmax.f32 %v441_v18, 0.0  ;;  %v490_v20 = vpop.f32.mrf.mxu1  ;;  %v836_v33 = vmax.f32 %v586_v17, 0.0 }
  0xce   : > { %v842_v21 = vmax.f32 %v490_v20, 0.0 }
  0xcf   : > { %v3026_v22 = vpack.c.bf16 %v841_v19, %v833_v14 }
  0xd0   : > { %v3028_v23 = vpack.c.bf16 %v842_v21, %v834_v16 }
  0xd3   : > { %v539_v24 = vpop.f32.mrf.mxu2 }
  0xd4   : > { %v843_v30 = vmax.f32 %v539_v24, 0.0  ;;  %v588_v31 = vpop.f32.mrf.mxu3  ;;  %v444_v32 = vpop.f32.mrf.mxu0 }
  0xd5   : > { %v844_v34 = vmax.f32 %v588_v31, 0.0  ;;  %v493_v25 = vpop.f32.mrf.mxu1  ;;  %v849_v38 = vmax.f32 %v444_v32, 0.0 }
  0xd6   : > { %v3030_v36 = vpack.c.bf16 %v843_v30, %v835_v29  ;;  %v850_v40 = vmax.f32 %v493_v25, 0.0 }
  0xd7   : > { %v3032_v37 = vpack.c.bf16 %v844_v34, %v836_v33  ;;  %2414 = vmatmul.msk.bf16.gmra.mxu0 %vm400_vm0, %v2911_v26  ;;  %2422 = vmatmul.msk.bf16.gmra.mxu1 %vm400_vm0, %v2911_v26 }
  0xd8   : > { %2430 = vmatmul.msk.bf16.gmra.mxu2 %vm400_vm0, %v2911_v26 }
  0xd9   : > { %2438 = vmatmul.msk.bf16.gmra.mxu3 %vm400_vm0, %v2911_v26 }
  0xdb   : > { %v542_v39 = vpop.f32.mrf.mxu2 }
  0xdc   : > { %v591_v41 = vpop.f32.mrf.mxu3  ;;  %v446_v43 = vpop.f32.mrf.mxu0  ;;  %v851_v50 = vmax.f32 %v542_v39, 0.0 }
  0xdd   : > { %v857_v44 = vmax.f32 %v446_v43, 0.0  ;;  %v495_v45 = vpop.f32.mrf.mxu1  ;;  %v852_v54 = vmax.f32 %v591_v41, 0.0 }
  0xde   : > { %v858_v46 = vmax.f32 %v495_v45, 0.0 }
  0xdf   : > { %v3042_v47 = vpack.c.bf16 %v857_v44, %v849_v38 }
  0xe0   : > { %v3044_v48 = vpack.c.bf16 %v858_v46, %v850_v40 }
  0xe3   : > { %v544_v49 = vpop.f32.mrf.mxu2 }
  0xe4   : > { %v859_v51 = vmax.f32 %v544_v49, 0.0  ;;  %v593_v52 = vpop.f32.mrf.mxu3  ;;  %v449_v53 = vpop.f32.mrf.mxu0 }
  0xe5   : > { %v860_v56 = vmax.f32 %v593_v52, 0.0  ;;  %v498_v26 = vpop.f32.mrf.mxu1  ;;  %v865_v59 = vmax.f32 %v449_v53, 0.0 }
  0xe6   : > { %v3046_v57 = vpack.c.bf16 %v859_v51, %v851_v50  ;;  %v866_v61 = vmax.f32 %v498_v26, 0.0 }
  0xe7   : > { %v3048_v58 = vpack.c.bf16 %v860_v56, %v852_v54  ;;  %2415 = vmatmul.msk.bf16.gmra.mxu0 %vm400_vm0, %v2924_v27  ;;  %2423 = vmatmul.msk.bf16.gmra.mxu1 %vm400_vm0, %v2924_v27 }
  0xe8   : > { %2431 = vmatmul.msk.bf16.gmra.mxu2 %vm400_vm0, %v2924_v27 }
  0xe9   : > { %2439 = vmatmul.msk.bf16.gmra.mxu3 %vm400_vm0, %v2924_v27 }
  0xeb   : > { %v547_v60 = vpop.f32.mrf.mxu2 }
  0xec   : > { %v596_v62 = vpop.f32.mrf.mxu3  ;;  %v451_v63 = vpop.f32.mrf.mxu0  ;;  %v867_v8 = vmax.f32 %v547_v60, 0.0 }
  0xed   : > { %v873_v0 = vmax.f32 %v451_v63, 0.0  ;;  %v500_v1 = vpop.f32.mrf.mxu1  ;;  %v868_v14 = vmax.f32 %v596_v62, 0.0 }
  0xee   : > { %v874_v4 = vmax.f32 %v500_v1, 0.0 }
  0xef   : > { %v3058_v5 = vpack.c.bf16 %v873_v0, %v865_v59 }
  0xf0   : > { %v3060_v6 = vpack.c.bf16 %v874_v4, %v866_v61 }
  0xf3   : > { %v549_v7 = vpop.f32.mrf.mxu2 }
  0xf4   : > { %v875_v9 = vmax.f32 %v549_v7, 0.0  ;;  %v598_v10 = vpop.f32.mrf.mxu3  ;;  %v3062_v11 = vpop.f32.mrf.mxu0 }
  0xf5   : > { %v876_v27 = vmax.f32 %v598_v10, 0.0  ;;  %v3064_v15 = vpop.f32.mrf.mxu1 }
  0xf6   : > { %v3066_v16 = vpack.c.bf16 %v875_v9, %v867_v8 }
  0xf7   : > { %v3068_v17 = vpack.c.bf16 %v876_v27, %v868_v14  ;;  %2416 = vmatmul.msk.bf16.gmra.mxu0 %vm400_vm0, %v2937_v28  ;;  %2424 = vmatmul.msk.bf16.gmra.mxu1 %vm400_vm0, %v2937_v28 }
  0xf8   : > { %2432 = vmatmul.msk.bf16.gmra.mxu2 %vm400_vm0, %v2937_v28 }
  0xf9   : > { %2440 = vmatmul.msk.bf16.gmra.mxu3 %vm400_vm0, %v2937_v28 }
  0xfb   : > { %v3078_v18 = vpop.f32.mrf.mxu2 }
  0xfc   : > { %v3080_v19 = vpop.f32.mrf.mxu3  ;;  %v3082_v20 = vpop.f32.mrf.mxu0 }
  0xfd   : > { %v3084_v21 = vpop.f32.mrf.mxu1 }
 0x103   : > { %v3086_v24 = vpop.f32.mrf.mxu2 }
 0x104   : > { %v3088_v29 = vpop.f32.mrf.mxu3  ;;  %v3090_v30 = vpop.f32.mrf.mxu0 }
 0x105   : > { %v3092_v31 = vpop.f32.mrf.mxu1  ;;  %v897_v4 = vmax.f32 %v3090_v30, 0.0  ;;  %v881_v30 = vmax.f32 %v3062_v11, 0.0 }
 0x107   : > { %2417 = vmatmul.msk.bf16.gmra.mxu0 %vm400_vm0, %v2954_v35  ;;  %2425 = vmatmul.msk.bf16.gmra.mxu1 %vm400_vm0, %v2954_v35 }
 0x108   : > { %2433 = vmatmul.msk.bf16.gmra.mxu2 %vm400_vm0, %v2954_v35 }
 0x109   : > { %2441 = vmatmul.msk.bf16.gmra.mxu3 %vm400_vm0, %v2954_v35 }
 0x10b   : > { %v3102_v28 = vpop.f32.mrf.mxu2 }
 0x10c   : > { %v3104_v32 = vpop.f32.mrf.mxu3  ;;  %v461_v33 = vpop.f32.mrf.mxu0 }
 0x10d   : > { %v3106_v34 = vpop.f32.mrf.mxu1  ;;  %v905_v7 = vmax.f32 %v461_v33, 0.0  ;;  %v889_v33 = vmax.f32 %v3082_v20, 0.0 }
 0x10e   : > { %v906_v10 = vmax.f32 %v3106_v34, 0.0 }
 0x113   : > { %v3108_v25 = vpop.f32.mrf.mxu2 }
 0x114   : > { %v3110_v38 = vpop.f32.mrf.mxu3  ;;  %v464_v39 = vpop.f32.mrf.mxu0  ;;  %v907_v11 = vmax.f32 %v3108_v25, 0.0 }
 0x115   : > { %v513_v40 = vpop.f32.mrf.mxu1  ;;  %v913_v60 = vmax.f32 %v464_v39, 0.0  ;;  %v908_v20 = vmax.f32 %v3110_v38, 0.0 }
 0x116   : > { %v914_v63 = vmax.f32 %v513_v40, 0.0 }
 0x117   : > { %2418 = vmatmul.msk.bf16.gmra.mxu0 %vm400_vm0, %v2971_v42  ;;  %2426 = vmatmul.msk.bf16.gmra.mxu1 %vm400_vm0, %v2971_v42 }
 0x118   : > { %2434 = vmatmul.msk.bf16.gmra.mxu2 %vm400_vm0, %v2971_v42 }
 0x119   : > { %2442 = vmatmul.msk.bf16.gmra.mxu3 %vm400_vm0, %v2971_v42 }
 0x11b   : > { %v562_v35 = vpop.f32.mrf.mxu2 }
 0x11c   : > { %v3120_v41 = vpop.f32.mrf.mxu3  ;;  %v466_v43 = vpop.f32.mrf.mxu0 }
 0x11d   : > { %v515_v44 = vpop.f32.mrf.mxu1  ;;  %v921_v61 = vmax.f32 %v466_v43, 0.0 }
 0x11e   : > { %v922_v0 = vmax.f32 %v515_v44, 0.0 }
 0x11f   : > { %v993_v8 = vpack.c.bf16 %v921_v61, %v913_v60  ;;  %v977_v60 = vpack.c.bf16 %v889_v33, %v881_v30 }
 0x120   : > { %v994_v14 = vpack.c.bf16 %v922_v0, %v914_v63  ;;  %v891_v63 = vmax.f32 %v3086_v24, 0.0  ;;  %v892_v0 = vmax.f32 %v3088_v29, 0.0 }
 0x123   : > { %v564_v45 = vpop.f32.mrf.mxu2 }
 0x124   : > { %v613_v46 = vpop.f32.mrf.mxu3  ;;  %v469_v49 = vpop.f32.mrf.mxu0 }
 0x125   : > { %v518_v50 = vpop.f32.mrf.mxu1  ;;  %v929_v42 = vmax.f32 %v469_v49, 0.0  ;;  %v924_v34 = vmax.f32 %v613_v46, 0.0 }
 0x126   : > { %v930_v52 = vmax.f32 %v518_v50, 0.0 }
 0x127   : > { %2419 = vmatmul.msk.bf16.gmra.mxu0 %vm400_vm0, %v2992_v55  ;;  %2427 = vmatmul.msk.bf16.gmra.mxu1 %vm400_vm0, %v2992_v55 }
 0x128   : > { %2435 = vmatmul.msk.bf16.gmra.mxu2 %vm400_vm0, %v2992_v55 }
 0x129   : > { %2443 = vmatmul.msk.bf16.gmra.mxu3 %vm400_vm0, %v2992_v55  ;;  %v898_v55 = vmax.f32 %v3092_v31, 0.0 }
 0x12b   : > { %v567_v51 = vpop.f32.mrf.mxu2 }
 0x12c   : > { %v616_v53 = vpop.f32.mrf.mxu3  ;;  %v471_v54 = vpop.f32.mrf.mxu0  ;;  %v931_v27 = vmax.f32 %v567_v51, 0.0  ;;  %v882_v51 = vmax.f32 %v3064_v15, 0.0 }
 0x12d   : > { %v937_v56 = vmax.f32 %v471_v54, 0.0  ;;  %v520_v26 = vpop.f32.mrf.mxu1  ;;  %v932_v40 = vmax.f32 %v616_v53, 0.0  ;;  %v915_v53 = vmax.f32 %v562_v35, 0.0 }
 0x12e   : > { %v938_v59 = vmax.f32 %v520_v26, 0.0  ;;  %v986_v26 = vpack.c.bf16 %v906_v10, %v898_v55 }
 0x12f   : > { %v1001_v62 = vpack.c.bf16 %v937_v56, %v929_v42  ;;  %v923_v42 = vmax.f32 %v564_v45, 0.0  ;;  %v890_v56 = vmax.f32 %v3084_v21, 0.0  ;;  %v899_v21 = vmax.f32 %v3102_v28, 0.0 }
 0x130   : > { %v1002_v1 = vpack.c.bf16 %v938_v59, %v930_v52  ;;  %v985_v52 = vpack.c.bf16 %v905_v7, %v897_v4  ;;  %v916_v59 = vmax.f32 %v3120_v41, 0.0  ;;  %v900_v41 = vmax.f32 %v3104_v32, 0.0 }
 0x131   : > { %1073 = vmatpush.bf16.msra.mxu0 %v1001_v62  ;;  %v995_v45 = vpack.c.bf16 %v923_v42, %v915_v53  ;;  %v978_v15 = vpack.c.bf16 %v890_v56, %v882_v51  ;;  %v987_v38 = vpack.c.bf16 %v907_v11, %v899_v21  ;;  %v883_v28 = vmax.f32 %v3078_v18, 0.0 }
 0x132   : > { %1122 = vmatpush.bf16.msra.mxu1 %v1002_v1  ;;  %v996_v46 = vpack.c.bf16 %v924_v34, %v916_v59  ;;  %v988_v1 = vpack.c.bf16 %v908_v20, %v900_v41  ;;  %v884_v4 = vmax.f32 %v3080_v19, 0.0 }
 0x133   : > { %v569_v9 = vpop.f32.mrf.mxu2  ;;  %v979_v32 = vpack.c.bf16 %v891_v63, %v883_v28 }
 0x134   : > { %v939_v49 = vmax.f32 %v569_v9, 0.0  ;;  %v618_v39 = vpop.f32.mrf.mxu3  ;;  %v3133_v43 = vpop.f32.mrf.mxu0  ;;  %v980_v55 = vpack.c.bf16 %v892_v0, %v884_v4  ;;  %v3308_v0 = vld [vmem:[%s3840_s2 + $0x28] sm:$0xff] }
 0x135   : > { %v940_v44 = vmax.f32 %v618_v39, 0.0  ;;  %v3135_v50 = vpop.f32.mrf.mxu1  ;;  %1074 = vmatpush.bf16.msra.mxu0 %v993_v8  ;;  %3877 = vst [vmem:[#allocation24_spill] sm:$0xff] %v3308_v0 }
 0x136   : > { %v1003_v31 = vpack.c.bf16 %v939_v49, %v931_v27  ;;  %1123 = vmatpush.bf16.msra.mxu1 %v994_v14  ;;  %v3241_v27 = vld [vmem:[%s3840_s2 + $0x10] sm:$0xff] }
 0x137   : > { %v1004_v54 = vpack.c.bf16 %v940_v44, %v932_v40  ;;  %3874 = vst [vmem:[#allocation21_spill] sm:$0xff] %v3241_v27 }
 0x138   : > { %1171 = vmatpush.bf16.msra.mxu2 %v1003_v31 }
 0x139   : > { %1220 = vmatpush.bf16.msra.mxu3 %v1004_v54  ;;  %1075 = vmatpush.bf16.msra.mxu0 %v985_v52  ;;  %v3266_v52 = vld [vmem:[%s3840_s2 + $0x18] sm:$0xff] }
 0x13a   : > { %1124 = vmatpush.bf16.msra.mxu1 %v986_v26  ;;  %3875 = vst [vmem:[#allocation22_spill] sm:$0xff] %v3266_v52 }
 0x13b   : > { %v3144_v61 = vpop.f32.mrf.mxu2 }
 0x13c   : > { %3861 = vst [vmem:[#allocation8_spill] sm:$0xff] %v3144_v61  ;;  %v3147_v62 = vpop.f32.mrf.mxu3  ;;  %1172 = vmatpush.bf16.msra.mxu2 %v995_v45  ;;  %v3149_v35 = vpop.f32.mrf.mxu0  ;;  %v3289_v45 = vld [vmem:[%s3840_s2 + $0x20] sm:$0xff] }
 0x13d   : > { %3862 = vst [vmem:[#allocation9_spill] sm:$0xff] %v3147_v62  ;;  %1221 = vmatpush.bf16.msra.mxu3 %v996_v46  ;;  %v3152_v25 = vpop.f32.mrf.mxu1  ;;  %1076 = vmatpush.bf16.msra.mxu0 %v977_v60  ;;  %v3319_v62 = vld [vmem:[%s3840_s2 + $0x30] sm:$0xff] }
 0x13e   : > { %3863 = vst [vmem:[#allocation10_spill] sm:$0xff] %v3152_v25  ;;  %1125 = vmatpush.bf16.msra.mxu1 %v978_v15 }
 0x13f   : > { %3876 = vst [vmem:[#allocation23_spill] sm:$0xff] %v3289_v45 }
 0x140   : > { %1173 = vmatpush.bf16.msra.mxu2 %v987_v38 }
 0x141   : > { %1222 = vmatpush.bf16.msra.mxu3 %v988_v1  ;;  %1077 = vmatpush.bf16.msra.mxu0 %v3058_v5 }
 0x142   : > { %1126 = vmatpush.bf16.msra.mxu1 %v3060_v6 }
 0x143   : > { %v3160_v7 = vpop.f32.mrf.mxu2 }
 0x144   : > { %3864 = vst [vmem:[#allocation11_spill] sm:$0xff] %v3160_v7  ;;  %v3162_v24 = vpop.f32.mrf.mxu3  ;;  %1174 = vmatpush.bf16.msra.mxu2 %v979_v32  ;;  %v3164_v8 = vpop.f32.mrf.mxu0 }
 0x145   : > { %3865 = vst [vmem:[#allocation12_spill] sm:$0xff] %v3162_v24  ;;  %1223 = vmatpush.bf16.msra.mxu3 %v980_v55  ;;  %v3166_v29 = vpop.f32.mrf.mxu1  ;;  %1078 = vmatpush.bf16.msra.mxu0 %v3042_v47  ;;  %v3184_v47 = vld [vmem:[%s3840_s2] sm:$0xff] }
 0x146   : > { %1127 = vmatpush.bf16.msra.mxu1 %v3044_v48  ;;  %3868 = vst [vmem:[#allocation15_spill] sm:$0xff] %v3184_v47 }
 0x148   : > { %1175 = vmatpush.bf16.msra.mxu2 %v3066_v16 }
 0x149   : > { %1224 = vmatpush.bf16.msra.mxu3 %v3068_v17  ;;  %1079 = vmatpush.bf16.msra.mxu0 %v3026_v22 }
 0x14a   : > { %1128 = vmatpush.bf16.msra.mxu1 %v3028_v23 }
 0x14b   : > { %v3174_v5 = vpop.f32.mrf.mxu2 }
 0x14c   : > { %3866 = vst [vmem:[#allocation13_spill] sm:$0xff] %v3174_v5  ;;  %v3176_v6 = vpop.f32.mrf.mxu3  ;;  %1176 = vmatpush.bf16.msra.mxu2 %v3046_v57  ;;  %v3179_v18 = vpop.f32.mrf.mxu0 }
 0x14d   : > { %3867 = vst [vmem:[#allocation14_spill] sm:$0xff] %v3176_v6  ;;  %1225 = vmatpush.bf16.msra.mxu3 %v3048_v58  ;;  %v3187_v48 = vpop.f32.mrf.mxu1  ;;  %1080 = vmatpush.bf16.msra.mxu0 %v3010_v2 }
 0x14e   : > { %1129 = vmatpush.bf16.msra.mxu1 %v3012_v3 }
 0x150   : > { %1177 = vmatpush.bf16.msra.mxu2 %v3030_v36  ;;  %1081 = vmatmul.bf16.vlgmr.msra.gmra.mxu0 %v3184_v47 }
 0x151   : > { %1226 = vmatpush.bf16.msra.mxu3 %v3032_v37  ;;  %1130 = vmatmul.bf16.vlgmr.msra.gmra.mxu1 %v3184_v47 }
 0x153   : > { %v3195_v22 = vpop.f32.mrf.mxu2 }
 0x154   : > { %3869 = vst [vmem:[#allocation16_spill] sm:$0xff] %v3195_v22  ;;  %v3197_v23 = vpop.f32.mrf.mxu3  ;;  %1178 = vmatpush.bf16.msra.mxu2 %v3014_v12  ;;  %v3200_v57 = vpop.f32.mrf.mxu0  ;;  %v3216_v12 = vld [vmem:[%s3840_s2 + $0x8] sm:$0xff] }
 0x155   : > { %3870 = vst [vmem:[#allocation17_spill] sm:$0xff] %v3197_v23  ;;  %1227 = vmatpush.bf16.msra.mxu3 %v3016_v13  ;;  %v3203_v2 = vpop.f32.mrf.mxu1 }
 0x156   : > { %3873 = vst [vmem:[#allocation20_spill] sm:$0xff] %v3216_v12 }
 0x157   : > { %1179 = vmatmul.bf16.vlgmr.msra.gmra.mxu2 %v3184_v47 }
 0x158   : > { %1228 = vmatmul.bf16.vlgmr.msra.gmra.mxu3 %v3184_v47 }
 0x15b   : > { %v3207_v3 = vpop.f32.mrf.mxu2 }
 0x15c   : > { %3871 = vst [vmem:[#allocation18_spill] sm:$0xff] %v3207_v3  ;;  %v3209_v36 = vpop.f32.mrf.mxu3  ;;  %v3211_v37 = vpop.f32.mrf.mxu0 }
 0x15d   : > { %3872 = vst [vmem:[#allocation19_spill] sm:$0xff] %v3209_v36  ;;  %v3218_v58 = vpop.f32.mrf.mxu1 }
 0x160   : > { %1086 = vmatmul.bf16.gmra.mxu0 %v3216_v12 }
 0x161   : > { %1135 = vmatmul.bf16.gmra.mxu1 %v3216_v12 }
 0x163   : > { %v3222_v13 = vpop.f32.mrf.mxu2 }
 0x164   : > { %v3224_v16 = vpop.f32.mrf.mxu3  ;;  %v3226_v17 = vpop.f32.mrf.mxu0 }
 0x165   : > { %v3228_v19 = vpop.f32.mrf.mxu1 }
 0x167   : > { %1184 = vmatmul.bf16.gmra.mxu2 %v3216_v12 }
 0x168   : > { %1233 = vmatmul.bf16.gmra.mxu3 %v3216_v12 }
 0x16b   : > { %v3232_v9 = vpop.f32.mrf.mxu2 }
 0x16c   : > { %v3234_v10 = vpop.f32.mrf.mxu3  ;;  %v3236_v14 = vpop.f32.mrf.mxu0 }
 0x16d   : > { %v3243_v49 = vpop.f32.mrf.mxu1 }
 0x170   : > { %1091 = vmatmul.bf16.gmra.mxu0 %v3241_v27 }
 0x171   : > { %1140 = vmatmul.bf16.gmra.mxu1 %v3241_v27 }
 0x173   : > { %v3247_v39 = vpop.f32.mrf.mxu2 }
 0x174   : > { %v3249_v40 = vpop.f32.mrf.mxu3  ;;  %v3251_v44 = vpop.f32.mrf.mxu0 }
 0x175   : > { %v3253_v30 = vpop.f32.mrf.mxu1 }
 0x177   : > { %1189 = vmatmul.bf16.gmra.mxu2 %v3241_v27 }
 0x178   : > { %1238 = vmatmul.bf16.gmra.mxu3 %v3241_v27 }
 0x17b   : > { %v3257_v42 = vpop.f32.mrf.mxu2 }
 0x17c   : > { %v3259_v31 = vpop.f32.mrf.mxu3  ;;  %v3261_v33 = vpop.f32.mrf.mxu0 }
 0x17d   : > { %v3268_v34 = vpop.f32.mrf.mxu1 }
 0x180   : > { %1096 = vmatmul.bf16.gmra.mxu0 %v3266_v52 }
 0x181   : > { %1145 = vmatmul.bf16.gmra.mxu1 %v3266_v52 }
 0x183   : > { %v3272_v54 = vpop.f32.mrf.mxu2 }
 0x184   : > { %v3274_v51 = vpop.f32.mrf.mxu3  ;;  %v3276_v56 = vpop.f32.mrf.mxu0 }
 0x185   : > { %v3278_v26 = vpop.f32.mrf.mxu1 }
 0x187   : > { %1194 = vmatmul.bf16.gmra.mxu2 %v3266_v52 }
 0x188   : > { %1243 = vmatmul.bf16.gmra.mxu3 %v3266_v52 }
 0x18b   : > { %v3282_v53 = vpop.f32.mrf.mxu2 }
 0x18c   : > { %v3284_v59 = vpop.f32.mrf.mxu3  ;;  %v657_v11 = vpop.f32.mrf.mxu0 }
 0x18d   : > { %v3291_v60 = vpop.f32.mrf.mxu1 }
 0x190   : > { %1101 = vmatmul.bf16.gmra.mxu0 %v3289_v45 }
 0x191   : > { %1150 = vmatmul.bf16.gmra.mxu1 %v3289_v45 }
 0x193   : > { %v3295_v20 = vpop.f32.mrf.mxu2 }
 0x194   : > { %v3297_v46 = vpop.f32.mrf.mxu3  ;;  %v660_v15 = vpop.f32.mrf.mxu0 }
 0x195   : > { %v709_v21 = vpop.f32.mrf.mxu1  ;;  %v917_v6 = vmax.f32 %v660_v15, 0.0 }
 0x196   : > { %v918_v22 = vmax.f32 %v709_v21, 0.0 }
 0x197   : > { %1199 = vmatmul.bf16.gmra.mxu2 %v3289_v45 }
 0x198   : > { %1248 = vmatmul.bf16.gmra.mxu3 %v3289_v45 }
 0x19b   : > { %v3301_v41 = vpop.f32.mrf.mxu2 }
 0x19c   : > { %v3303_v63 = vpop.f32.mrf.mxu3  ;;  %v662_v38 = vpop.f32.mrf.mxu0 }
 0x19d   : > { %v711_v1 = vpop.f32.mrf.mxu1  ;;  %v925_v5 = vmax.f32 %v662_v38, 0.0  ;;  %v885_v38 = vmax.f32 %v3251_v44, 0.0  ;;  %v920_v44 = vmax.f32 %v3303_v63, 0.0  ;;  %v903_v63 = vmax.f32 %v3282_v53, 0.0 }
 0x19e   : > { %v926_v36 = vmax.f32 %v711_v1, 0.0  ;;  %v878_v1 = vmax.f32 %v3243_v49, 0.0  ;;  %v854_v49 = vmax.f32 %v3203_v2, 0.0  ;;  %v861_v53 = vmax.f32 %v3211_v37, 0.0 }
 0x19f   : > { %v837_v2 = vmax.f32 %v3164_v8, 0.0  ;;  %v879_v37 = vmax.f32 %v3247_v39, 0.0  ;;  %v872_v8 = vmax.f32 %v3234_v10, 0.0  ;;  %v821_v39 = vmax.f32 %v3133_v43, 0.0 }
 0x1a0   : > { %1106 = vmatmul.bf16.gmra.mxu0 %v3308_v0  ;;  %v998_v15 = vpack.c.bf16 %v926_v36, %v918_v22  ;;  %v886_v22 = vmax.f32 %v3253_v30, 0.0  ;;  %v870_v30 = vmax.f32 %v3228_v19, 0.0  ;;  %v853_v19 = vmax.f32 %v3200_v57, 0.0 }
 0x1a1   : > { %1155 = vmatmul.bf16.gmra.mxu1 %v3308_v0  ;;  %v888_v57 = vmax.f32 %v3259_v31, 0.0 }
 0x1a2   : > { %v965_v31 = vpack.c.bf16 %v861_v53, %v853_v19 }
 0x1a3   : > { %v760_v28 = vpop.f32.mrf.mxu2 }
 0x1a4   : > { %v3312_v4 = vpop.f32.mrf.mxu3  ;;  %v665_v32 = vpop.f32.mrf.mxu0 }
 0x1a5   : > { %v714_v55 = vpop.f32.mrf.mxu1  ;;  %v933_v45 = vmax.f32 %v665_v32, 0.0  ;;  %v901_v32 = vmax.f32 %v3276_v56, 0.0  ;;  %v893_v56 = vmax.f32 %v3261_v33, 0.0  ;;  %v869_v33 = vmax.f32 %v3226_v17, 0.0  ;;  %v3345_v17 = vld [vmem:[%s3840_s2 + $0x38] sm:$0xff] }
 0x1a6   : > { %v934_v27 = vmax.f32 %v714_v55, 0.0  ;;  %v902_v55 = vmax.f32 %v3278_v26, 0.0 }
 0x1a7   : > { %1204 = vmatmul.bf16.gmra.mxu2 %v3308_v0 }
 0x1a8   : > { %1253 = vmatmul.bf16.gmra.mxu3 %v3308_v0  ;;  %v909_v0 = vmax.f32 %v657_v11, 0.0 }
 0x1aa   : > { %v989_v26 = vpack.c.bf16 %v909_v0, %v901_v32 }
 0x1ab   : > { %v763_v52 = vpop.f32.mrf.mxu2 }
 0x1ac   : > { %v812_v12 = vpop.f32.mrf.mxu3  ;;  %v667_v47 = vpop.f32.mrf.mxu0 }
 0x1ad   : > { %v941_v61 = vmax.f32 %v667_v47, 0.0  ;;  %v716_v24 = vpop.f32.mrf.mxu1  ;;  %v997_v47 = vpack.c.bf16 %v925_v5, %v917_v6  ;;  %v928_v5 = vmax.f32 %v3312_v4, 0.0  ;;  %v896_v4 = vmax.f32 %v3274_v51, 0.0 }
 0x1ae   : > { %v942_v7 = vmax.f32 %v716_v24, 0.0  ;;  %v910_v24 = vmax.f32 %v3291_v60, 0.0  ;;  %v981_v60 = vpack.c.bf16 %v893_v56, %v885_v38  ;;  %v845_v51 = vmax.f32 %v3179_v18, 0.0 }
 0x1af   : > { %v1005_v23 = vpack.c.bf16 %v941_v61, %v933_v45  ;;  %v935_v61 = vmax.f32 %v763_v52, 0.0  ;;  %v911_v52 = vmax.f32 %v3295_v20, 0.0  ;;  %v1000_v0 = vpack.c.bf16 %v928_v5, %v920_v44  ;;  %v3884_v44 = vld [vmem:[#allocation14_spill] sm:$0xff] }
 0x1b0   : > { %v1006_v3 = vpack.c.bf16 %v942_v7, %v934_v27  ;;  %1111 = vmatmul.bf16.gmra.mxu0 %v3319_v62  ;;  %v936_v7 = vmax.f32 %v812_v12, 0.0  ;;  %v990_v36 = vpack.c.bf16 %v910_v24, %v902_v55  ;;  %v919_v12 = vmax.f32 %v3301_v41, 0.0 }
 0x1b1   : > { %1160 = vmatmul.bf16.gmra.mxu1 %v3319_v62  ;;  %1269 = vmatpush.bf16.msrb.mxu0 %v1005_v23  ;;  %v927_v23 = vmax.f32 %v760_v28, 0.0  ;;  %v877_v41 = vmax.f32 %v3236_v14, 0.0  ;;  %v904_v20 = vmax.f32 %v3284_v59, 0.0  ;;  %v991_v14 = vpack.c.bf16 %v911_v52, %v903_v63 }
 0x1b2   : > { %1318 = vmatpush.bf16.msrb.mxu1 %v1006_v3  ;;  %v862_v55 = vmax.f32 %v3218_v58, 0.0  ;;  %v974_v24 = vpack.c.bf16 %v878_v1, %v870_v30  ;;  %v887_v59 = vmax.f32 %v3257_v42, 0.0  ;;  %v838_v58 = vmax.f32 %v3166_v29, 0.0 }
 0x1b3   : > { %v765_v25 = vpop.f32.mrf.mxu2  ;;  %v999_v11 = vpack.c.bf16 %v927_v23, %v919_v12  ;;  %v880_v42 = vmax.f32 %v3249_v40, 0.0  ;;  %v822_v18 = vmax.f32 %v3135_v50, 0.0  ;;  %v829_v40 = vmax.f32 %v3149_v35, 0.0  ;;  %v3881_v50 = vld [vmem:[#allocation16_spill] sm:$0xff] }
 0x1b4   : > { %v943_v45 = vmax.f32 %v765_v25, 0.0  ;;  %v814_v21 = vpop.f32.mrf.mxu3  ;;  %v894_v25 = vmax.f32 %v3268_v34, 0.0  ;;  %v912_v34 = vmax.f32 %v3297_v46, 0.0  ;;  %v895_v46 = vmax.f32 %v3272_v54, 0.0 }
 0x1b5   : > { %v944_v27 = vmax.f32 %v814_v21, 0.0  ;;  %1270 = vmatpush.bf16.msrb.mxu0 %v997_v47  ;;  %v973_v47 = vpack.c.bf16 %v877_v41, %v869_v33  ;;  %v871_v21 = vmax.f32 %v3232_v9, 0.0  ;;  %v3878_v9 = vld [vmem:[#allocation10_spill] sm:$0xff]  ;;  %v957_v10 = vpack.c.bf16 %v845_v51, %v837_v2  ;;  %v3890_v51 = vld [vmem:[#allocation20_spill] sm:$0xff] }
 0x1b6   : > { %v1007_v3 = vpack.c.bf16 %v943_v45, %v935_v61  ;;  %1319 = vmatpush.bf16.msrb.mxu1 %v998_v15  ;;  %v982_v28 = vpack.c.bf16 %v894_v25, %v886_v22  ;;  %v992_v32 = vpack.c.bf16 %v912_v34, %v904_v20  ;;  %v983_v54 = vpack.c.bf16 %v895_v46, %v887_v59  ;;  %v3888_v20 = vld [vmem:[#allocation9_spill] sm:$0xff]  ;;  %v3889_v46 = vld [vmem:[#allocation15_spill] sm:$0xff] }
 0x1b7   : > { %v1008_v6 = vpack.c.bf16 %v944_v27, %v936_v7  ;;  %1209 = vmatmul.bf16.gmra.mxu2 %v3319_v62  ;;  %v984_v15 = vpack.c.bf16 %v896_v4, %v888_v57  ;;  %v846_v61 = vmax.f32 %v3187_v48, 0.0  ;;  %v966_v45 = vpack.c.bf16 %v862_v55, %v854_v49 }
 0x1b8   : > { %1258 = vmatmul.bf16.gmra.mxu3 %v3319_v62  ;;  %1367 = vmatpush.bf16.msrb.mxu2 %v1007_v3  ;;  %v863_v7 = vmax.f32 %v3222_v13, 0.0  ;;  %v975_v29 = vpack.c.bf16 %v879_v37, %v871_v21  ;;  %v864_v48 = vmax.f32 %v3224_v16, 0.0  ;;  %v976_v27 = vpack.c.bf16 %v880_v42, %v872_v8  ;;  %v3879_v3 = vld [vmem:[#allocation18_spill] sm:$0xff]  ;;  %v3880_v13 = vld [vmem:[#allocation19_spill] sm:$0xff]  ;;  %v3882_v16 = vld [vmem:[#allocation17_spill] sm:$0xff] }
 0x1b9   : > { %1416 = vmatpush.bf16.msrb.mxu3 %v1008_v6  ;;  %1271 = vmatpush.bf16.msrb.mxu0 %v989_v26  ;;  %v830_v38 = vmax.f32 %v3878_v9, 0.0  ;;  %v958_v23 = vpack.c.bf16 %v846_v61, %v838_v58  ;;  %v855_v43 = vmax.f32 %v3879_v3, 0.0  ;;  %v856_v56 = vmax.f32 %v3880_v13, 0.0  ;;  %v3891_v13 = vld [vmem:[#allocation21_spill] sm:$0xff] }
 0x1ba   : > { %1320 = vmatpush.bf16.msrb.mxu1 %v990_v36  ;;  %v847_v26 = vmax.f32 %v3881_v50, 0.0  ;;  %v848_v5 = vmax.f32 %v3882_v16, 0.0  ;;  %v949_v22 = vpack.c.bf16 %v829_v40, %v821_v39  ;;  %v3883_v36 = vld [vmem:[#allocation13_spill] sm:$0xff]  ;;  %v840_v33 = vmax.f32 %v3884_v44, 0.0 }
 0x1bb   : > { %v967_v35 = vpack.c.bf16 %v863_v7, %v855_v43  ;;  %v968_v6 = vpack.c.bf16 %v864_v48, %v856_v56  ;;  %v950_v25 = vpack.c.bf16 %v830_v38, %v822_v18  ;;  %v839_v12 = vmax.f32 %v3883_v36, 0.0 }
 0x1bc   : > { %1368 = vmatpush.bf16.msrb.mxu2 %v999_v11  ;;  %v3885_v11 = vld [vmem:[#allocation11_spill] sm:$0xff]  ;;  %v960_v1 = vpack.c.bf16 %v848_v5, %v840_v33  ;;  %v824_v19 = vmax.f32 %v3888_v20, 0.0 }
 0x1bd   : > { %1417 = vmatpush.bf16.msrb.mxu3 %v1000_v0  ;;  %1272 = vmatpush.bf16.msrb.mxu0 %v981_v60  ;;  %v831_v30 = vmax.f32 %v3885_v11, 0.0  ;;  %v959_v60 = vpack.c.bf16 %v847_v26, %v839_v12  ;;  %v3886_v0 = vld [vmem:[#allocation12_spill] sm:$0xff] }
 0x1be   : > { %1321 = vmatpush.bf16.msrb.mxu1 %v982_v28  ;;  %v832_v41 = vmax.f32 %v3886_v0, 0.0  ;;  %v3887_v28 = vld [vmem:[#allocation8_spill] sm:$0xff] }
 0x1bf   : > { %v823_v63 = vmax.f32 %v3887_v28, 0.0 }
 0x1c0   : > { %1369 = vmatpush.bf16.msrb.mxu2 %v991_v14  ;;  %1116 = vmatmul.bf16.gmra.mxu0 %v3345_v17  ;;  %v952_v49 = vpack.c.bf16 %v832_v41, %v824_v19 }
 0x1c1   : > { %1418 = vmatpush.bf16.msrb.mxu3 %v992_v32  ;;  %1165 = vmatmul.bf16.gmra.mxu1 %v3345_v17  ;;  %v951_v14 = vpack.c.bf16 %v831_v30, %v823_v63 }
 0x1c2   : > { %1273 = vmatpush.bf16.msrb.mxu0 %v973_v47  ;;  %1322 = vmatpush.bf16.msrb.mxu1 %v974_v24 }
 0x1c4   : > { %1370 = vmatpush.bf16.msrb.mxu2 %v983_v54 }
 0x1c5   : > { %1419 = vmatpush.bf16.msrb.mxu3 %v984_v15 }
 0x1c6   : > { %1274 = vmatpush.bf16.msrb.mxu0 %v965_v31  ;;  %1323 = vmatpush.bf16.msrb.mxu1 %v966_v45 }
 0x1c7   : > { %1214 = vmatmul.bf16.gmra.mxu2 %v3345_v17 }
 0x1c8   : > { %1263 = vmatmul.bf16.gmra.mxu3 %v3345_v17  ;;  %1371 = vmatpush.bf16.msrb.mxu2 %v975_v29 }
 0x1c9   : > { %1420 = vmatpush.bf16.msrb.mxu3 %v976_v27 }
 0x1ca   : > { %1275 = vmatpush.bf16.msrb.mxu0 %v957_v10  ;;  %1324 = vmatpush.bf16.msrb.mxu1 %v958_v23 }
 0x1cc   : > { %1372 = vmatpush.bf16.msrb.mxu2 %v967_v35 }
 0x1cd   : > { %1421 = vmatpush.bf16.msrb.mxu3 %v968_v6  ;;  %v1082_v52 = vpop.f32.mrf.mxu0 }
 0x1ce   : > { %v1131_v34 = vpop.f32.mrf.mxu1  ;;  %1276 = vmatpush.bf16.msrb.mxu0 %v949_v22  ;;  %1325 = vmatpush.bf16.msrb.mxu1 %v950_v25  ;;  %v1465_v53 = vmax.f32 %v1082_v52, 0.0 }
 0x1cf   : > { %v1466_v4 = vmax.f32 %v1131_v34, 0.0 }
 0x1d0   : > { %1373 = vmatpush.bf16.msrb.mxu2 %v959_v60 }
 0x1d1   : > { %1422 = vmatpush.bf16.msrb.mxu3 %v960_v1  ;;  %1277 = vmatmul.bf16.vlgmr.msrb.gmra.mxu0 %v3889_v46  ;;  %v3892_v1 = vld [vmem:[#allocation22_spill] sm:$0xff] }
 0x1d2   : > { %1326 = vmatmul.bf16.vlgmr.msrb.gmra.mxu1 %v3889_v46 }
 0x1d4   : > { %1374 = vmatpush.bf16.msrb.mxu2 %v951_v14 }
 0x1d5   : > { %1423 = vmatpush.bf16.msrb.mxu3 %v952_v49  ;;  %v1084_v32 = vpop.f32.mrf.mxu0 }
 0x1d6   : > { %v1473_v55 = vmax.f32 %v1084_v32, 0.0  ;;  %v1133_v47 = vpop.f32.mrf.mxu1 }
 0x1d7   : > { %v1474_v24 = vmax.f32 %v1133_v47, 0.0  ;;  %1375 = vmatmul.bf16.vlgmr.msrb.gmra.mxu2 %v3889_v46 }
 0x1d8   : > { %v3387_v59 = vpack.c.bf16 %v1473_v55, %v1465_v53  ;;  %1424 = vmatmul.bf16.vlgmr.msrb.gmra.mxu3 %v3889_v46 }
 0x1d9   : > { %v3390_v57 = vpack.c.bf16 %v1474_v24, %v1466_v4 }
 0x1da   : > { %v1180_v2 = vpop.f32.mrf.mxu2 }
 0x1db   : > { %v1229_v37 = vpop.f32.mrf.mxu3  ;;  %v1467_v15 = vmax.f32 %v1180_v2, 0.0 }
 0x1dc   : > { %v1468_v45 = vmax.f32 %v1229_v37, 0.0 }
 0x1dd   : > { %v1087_v54 = vpop.f32.mrf.mxu0 }
 0x1de   : > { %v1136_v58 = vpop.f32.mrf.mxu1  ;;  %v1481_v21 = vmax.f32 %v1087_v54, 0.0 }
 0x1df   : > { %v1482_v39 = vmax.f32 %v1136_v58, 0.0 }
 0x1e1   : > { %1282 = vmatmul.bf16.gmra.mxu0 %v3890_v51 }
 0x1e2   : > { %1331 = vmatmul.bf16.gmra.mxu1 %v3890_v51  ;;  %v1182_v42 = vpop.f32.mrf.mxu2 }
 0x1e3   : > { %v1475_v61 = vmax.f32 %v1182_v42, 0.0  ;;  %v1231_v31 = vpop.f32.mrf.mxu3 }
 0x1e4   : > { %v1476_v8 = vmax.f32 %v1231_v31, 0.0 }
 0x1e5   : > { %v3394_v7 = vpack.c.bf16 %v1475_v61, %v1467_v15  ;;  %v1089_v29 = vpop.f32.mrf.mxu0  ;;  %v3893_v61 = vld [vmem:[#allocation23_spill] sm:$0xff] }
 0x1e6   : > { %v3396_v18 = vpack.c.bf16 %v1476_v8, %v1468_v45  ;;  %v1489_v40 = vmax.f32 %v1089_v29, 0.0  ;;  %v1138_v48 = vpop.f32.mrf.mxu1 }
 0x1e7   : > { %v1490_v27 = vmax.f32 %v1138_v48, 0.0  ;;  %1380 = vmatmul.bf16.gmra.mxu2 %v3890_v51 }
 0x1e8   : > { %v3399_v9 = vpack.c.bf16 %v1489_v40, %v1481_v21  ;;  %1429 = vmatmul.bf16.gmra.mxu3 %v3890_v51 }
 0x1e9   : > { %v3402_v38 = vpack.c.bf16 %v1490_v27, %v1482_v39 }
 0x1ea   : > { %v1185_v10 = vpop.f32.mrf.mxu2 }
 0x1eb   : > { %v1234_v23 = vpop.f32.mrf.mxu3  ;;  %v1483_v50 = vmax.f32 %v1185_v10, 0.0 }
 0x1ec   : > { %v1484_v16 = vmax.f32 %v1234_v23, 0.0 }
 0x1ed   : > { %v1092_v3 = vpop.f32.mrf.mxu0 }
 0x1ee   : > { %v1141_v43 = vpop.f32.mrf.mxu1  ;;  %v1497_v5 = vmax.f32 %v1092_v3, 0.0 }
 0x1ef   : > { %v1498_v22 = vmax.f32 %v1141_v43, 0.0 }
 0x1f1   : > { %1287 = vmatmul.bf16.gmra.mxu0 %v3891_v13 }
 0x1f2   : > { %1336 = vmatmul.bf16.gmra.mxu1 %v3891_v13  ;;  %v1187_v56 = vpop.f32.mrf.mxu2 }
 0x1f3   : > { %v1491_v26 = vmax.f32 %v1187_v56, 0.0  ;;  %v1236_v35 = vpop.f32.mrf.mxu3  ;;  %v3894_v56 = vld [vmem:[#allocation24_spill] sm:$0xff] }
 0x1f4   : > { %v1492_v6 = vmax.f32 %v1236_v35, 0.0 }
 0x1f5   : > { %v3406_v25 = vpack.c.bf16 %v1491_v26, %v1483_v50  ;;  %v1094_v36 = vpop.f32.mrf.mxu0 }
 0x1f6   : > { %v3408_v12 = vpack.c.bf16 %v1492_v6, %v1484_v16  ;;  %v1505_v44 = vmax.f32 %v1094_v36, 0.0  ;;  %v1143_v33 = vpop.f32.mrf.mxu1 }
 0x1f7   : > { %v1506_v52 = vmax.f32 %v1143_v33, 0.0  ;;  %1385 = vmatmul.bf16.gmra.mxu2 %v3891_v13 }
 0x1f8   : > { %v3411_v11 = vpack.c.bf16 %v1505_v44, %v1497_v5  ;;  %1434 = vmatmul.bf16.gmra.mxu3 %v3891_v13 }
 0x1f9   : > { %v3414_v30 = vpack.c.bf16 %v1506_v52, %v1498_v22 }
 0x1fa   : > { %v1190_v60 = vpop.f32.mrf.mxu2 }
 0x1fb   : > { %v1239_v34 = vpop.f32.mrf.mxu3  ;;  %v1499_v63 = vmax.f32 %v1190_v60, 0.0 }
 0x1fc   : > { %v1500_v46 = vmax.f32 %v1239_v34, 0.0 }
 0x1fd   : > { %v1097_v0 = vpop.f32.mrf.mxu0 }
 0x1fe   : > { %v1146_v41 = vpop.f32.mrf.mxu1  ;;  %v1513_v14 = vmax.f32 %v1097_v0, 0.0 }
 0x1ff   : > { %v1514_v53 = vmax.f32 %v1146_v41, 0.0 }
 0x201   : > { %1292 = vmatmul.bf16.gmra.mxu0 %v3892_v1 }
 0x202   : > { %1341 = vmatmul.bf16.gmra.mxu1 %v3892_v1  ;;  %v1192_v28 = vpop.f32.mrf.mxu2 }
 0x203   : > { %v1507_v20 = vmax.f32 %v1192_v28, 0.0  ;;  %v1241_v19 = vpop.f32.mrf.mxu3 }
 0x204   : > { %v1508_v49 = vmax.f32 %v1241_v19, 0.0 }
 0x205   : > { %v3418_v4 = vpack.c.bf16 %v1507_v20, %v1499_v63  ;;  %v1099_v32 = vpop.f32.mrf.mxu0 }
 0x206   : > { %v3420_v55 = vpack.c.bf16 %v1508_v49, %v1500_v46  ;;  %v1521_v47 = vmax.f32 %v1099_v32, 0.0  ;;  %v1148_v24 = vpop.f32.mrf.mxu1 }
 0x207   : > { %v1522_v2 = vmax.f32 %v1148_v24, 0.0  ;;  %1390 = vmatmul.bf16.gmra.mxu2 %v3892_v1 }
 0x208   : > { %v3423_v37 = vpack.c.bf16 %v1521_v47, %v1513_v14  ;;  %1439 = vmatmul.bf16.gmra.mxu3 %v3892_v1 }
 0x209   : > { %v3426_v54 = vpack.c.bf16 %v1522_v2, %v1514_v53 }
 0x20a   : > { %v1195_v58 = vpop.f32.mrf.mxu2 }
 0x20b   : > { %v1244_v51 = vpop.f32.mrf.mxu3  ;;  %v1515_v45 = vmax.f32 %v1195_v58, 0.0 }
 0x20c   : > { %v1516_v39 = vmax.f32 %v1244_v51, 0.0 }
 0x20d   : > { %v3428_v42 = vpop.f32.mrf.mxu0 }
 0x20e   : > { %v3430_v15 = vpop.f32.mrf.mxu1 }
 0x211   : > { %1297 = vmatmul.bf16.gmra.mxu0 %v3893_v61 }
 0x212   : > { %1346 = vmatmul.bf16.gmra.mxu1 %v3893_v61  ;;  %v1197_v31 = vpop.f32.mrf.mxu2 }
 0x213   : > { %v1523_v21 = vmax.f32 %v1197_v31, 0.0  ;;  %v1246_v8 = vpop.f32.mrf.mxu3 }
 0x214   : > { %v1524_v29 = vmax.f32 %v1246_v8, 0.0 }
 0x215   : > { %v3434_v40 = vpack.c.bf16 %v1523_v21, %v1515_v45  ;;  %v3436_v48 = vpop.f32.mrf.mxu0 }
 0x216   : > { %v3438_v27 = vpack.c.bf16 %v1524_v29, %v1516_v39  ;;  %v3440_v10 = vpop.f32.mrf.mxu1 }
 0x217   : > { %1395 = vmatmul.bf16.gmra.mxu2 %v3893_v61 }
 0x218   : > { %1444 = vmatmul.bf16.gmra.mxu3 %v3893_v61 }
 0x21a   : > { %v3444_v23 = vpop.f32.mrf.mxu2 }
 0x21b   : > { %v3446_v3 = vpop.f32.mrf.mxu3 }
 0x21d   : > { %v1107_v43 = vpop.f32.mrf.mxu0 }
 0x21e   : > { %v3448_v13 = vpop.f32.mrf.mxu1  ;;  %v1545_v31 = vmax.f32 %v1107_v43, 0.0 }
 0x21f   : > { %v1546_v8 = vmax.f32 %v3448_v13, 0.0 }
 0x221   : > { %1302 = vmatmul.bf16.gmra.mxu0 %v3894_v56 }
 0x222   : > { %1351 = vmatmul.bf16.gmra.mxu1 %v3894_v56  ;;  %v3452_v50 = vpop.f32.mrf.mxu2 }
 0x223   : > { %v3454_v26 = vpop.f32.mrf.mxu3 }
 0x225   : > { %v1109_v35 = vpop.f32.mrf.mxu0 }
 0x226   : > { %v1158_v16 = vpop.f32.mrf.mxu1  ;;  %v1553_v45 = vmax.f32 %v1109_v35, 0.0 }
 0x227   : > { %1400 = vmatmul.bf16.gmra.mxu2 %v3894_v56  ;;  %v1554_v39 = vmax.f32 %v1158_v16, 0.0 }
 0x228   : > { %1449 = vmatmul.bf16.gmra.mxu3 %v3894_v56 }
 0x229   : > { %v1634_v43 = vpack.c.bf16 %v1554_v39, %v1546_v8 }
 0x22a   : > { %v3458_v5 = vpop.f32.mrf.mxu2 }
 0x22b   : > { %v3460_v6 = vpop.f32.mrf.mxu3 }
 0x22d   : > { %v1112_v22 = vpop.f32.mrf.mxu0 }
 0x22e   : > { %v1161_v36 = vpop.f32.mrf.mxu1  ;;  %v1561_v53 = vmax.f32 %v1112_v22, 0.0 }
 0x22f   : > { %v1562_v24 = vmax.f32 %v1161_v36, 0.0  ;;  %v1537_v36 = vmax.f32 %v3436_v48, 0.0 }
 0x231   : > { %1307 = vmatmul.bf16.gmra.mxu0 %v3319_v62 }
 0x232   : > { %1356 = vmatmul.bf16.gmra.mxu1 %v3319_v62  ;;  %v3464_v44 = vpop.f32.mrf.mxu2 }
 0x233   : > { %v3466_v33 = vpop.f32.mrf.mxu3 }
 0x235   : > { %v1114_v52 = vpop.f32.mrf.mxu0 }
 0x236   : > { %v1163_v60 = vpop.f32.mrf.mxu1  ;;  %v1569_v32 = vmax.f32 %v1114_v52, 0.0  ;;  %v1633_v52 = vpack.c.bf16 %v1553_v45, %v1545_v31 }
 0x237   : > { %1405 = vmatmul.bf16.gmra.mxu2 %v3319_v62  ;;  %v1570_v2 = vmax.f32 %v1163_v60, 0.0  ;;  %v1530_v60 = vmax.f32 %v3430_v15, 0.0 }
 0x238   : > { %1454 = vmatmul.bf16.gmra.mxu3 %v3319_v62  ;;  %v1641_v21 = vpack.c.bf16 %v1569_v32, %v1561_v53 }
 0x239   : > { %v1642_v29 = vpack.c.bf16 %v1570_v2, %v1562_v24 }
 0x23a   : > { %v3470_v34 = vpop.f32.mrf.mxu2 }
 0x23b   : > { %v3472_v0 = vpop.f32.mrf.mxu3  ;;  %v1563_v32 = vmax.f32 %v3470_v34, 0.0  ;;  %v1547_v34 = vmax.f32 %v3458_v5, 0.0 }
 0x23c   : > { %v1564_v2 = vmax.f32 %v3472_v0, 0.0  ;;  %v1548_v0 = vmax.f32 %v3460_v6, 0.0 }
 0x23d   : > { %v1117_v41 = vpop.f32.mrf.mxu0 }
 0x23e   : > { %v1166_v1 = vpop.f32.mrf.mxu1  ;;  %v1577_v20 = vmax.f32 %v1117_v41, 0.0  ;;  %v1538_v41 = vmax.f32 %v3440_v10, 0.0 }
 0x23f   : > { %v1578_v19 = vmax.f32 %v1166_v1, 0.0 }
 0x241   : > { %1312 = vmatmul.bf16.gmra.mxu0 %v3345_v17 }
 0x242   : > { %1361 = vmatmul.bf16.gmra.mxu1 %v3345_v17  ;;  %v3476_v28 = vpop.f32.mrf.mxu2 }
 0x243   : > { %v3478_v63 = vpop.f32.mrf.mxu3 }
 0x245   : > { %v1119_v46 = vpop.f32.mrf.mxu0 }
 0x246   : > { %v1585_v14 = vmax.f32 %v1119_v46, 0.0  ;;  %v1168_v49 = vpop.f32.mrf.mxu1 }
 0x247   : > { %v1586_v62 = vmax.f32 %v1168_v49, 0.0  ;;  %1410 = vmatmul.bf16.gmra.mxu2 %v3345_v17 }
 0x248   : > { %v1649_v47 = vpack.c.bf16 %v1585_v14, %v1577_v20  ;;  %1459 = vmatmul.bf16.gmra.mxu3 %v3345_v17  ;;  %v1529_v17 = vmax.f32 %v3428_v42, 0.0  ;;  %v1626_v14 = vpack.c.bf16 %v1538_v41, %v1530_v60  ;;  %v1571_v42 = vmax.f32 %v3476_v28, 0.0 }
 0x249   : > { %v1650_v58 = vpack.c.bf16 %v1586_v62, %v1578_v19  ;;  %v1572_v62 = vmax.f32 %v3478_v63, 0.0  ;;  %v1555_v28 = vmax.f32 %v3464_v44, 0.0  ;;  %v1556_v63 = vmax.f32 %v3466_v33, 0.0 }
 0x24a   : > { %v1215_v51 = vpop.f32.mrf.mxu2  ;;  %1665 = vmatpush.bf16.msra.mxu0 %v1649_v47  ;;  %v1625_v20 = vpack.c.bf16 %v1537_v36, %v1529_v17  ;;  %v1539_v44 = vmax.f32 %v3452_v50, 0.0  ;;  %v1540_v33 = vmax.f32 %v3454_v26, 0.0 }
 0x24b   : > { %v1264_v61 = vpop.f32.mrf.mxu3  ;;  %1679 = vmatpush.bf16.msra.mxu1 %v1650_v58  ;;  %v1579_v1 = vmax.f32 %v1215_v51, 0.0  ;;  %v1643_v51 = vpack.c.bf16 %v1571_v42, %v1563_v32  ;;  %v1644_v31 = vpack.c.bf16 %v1572_v62, %v1564_v2  ;;  %v1635_v39 = vpack.c.bf16 %v1555_v28, %v1547_v34 }
 0x24c   : > { %v1580_v19 = vmax.f32 %v1264_v61, 0.0 }
 0x24e   : > { %v1278_v56 = vpop.f32.mrf.mxu0  ;;  %1666 = vmatpush.bf16.msra.mxu0 %v1641_v21 }
 0x24f   : > { %v1327_v22 = vpop.f32.mrf.mxu1  ;;  %1680 = vmatpush.bf16.msra.mxu1 %v1642_v29  ;;  %v1469_v49 = vmax.f32 %v1278_v56, 0.0  ;;  %v1636_v29 = vpack.c.bf16 %v1556_v63, %v1548_v0 }
 0x250   : > { %v1470_v15 = vmax.f32 %v1327_v22, 0.0 }
 0x252   : > { %v1217_v35 = vpop.f32.mrf.mxu2  ;;  %1667 = vmatpush.bf16.msra.mxu0 %v1633_v52 }
 0x253   : > { %v1587_v13 = vmax.f32 %v1217_v35, 0.0  ;;  %v1266_v16 = vpop.f32.mrf.mxu3  ;;  %1681 = vmatpush.bf16.msra.mxu1 %v1634_v43 }
 0x254   : > { %v1588_v46 = vmax.f32 %v1266_v16, 0.0 }
 0x255   : > { %v1651_v48 = vpack.c.bf16 %v1587_v13, %v1579_v1 }
 0x256   : > { %v1652_v53 = vpack.c.bf16 %v1588_v46, %v1580_v19  ;;  %v1280_v10 = vpop.f32.mrf.mxu0  ;;  %1668 = vmatpush.bf16.msra.mxu0 %v1625_v20 }
 0x257   : > { %v1477_v47 = vmax.f32 %v1280_v10, 0.0  ;;  %v1329_v24 = vpop.f32.mrf.mxu1  ;;  %1682 = vmatpush.bf16.msra.mxu1 %v1626_v14  ;;  %1693 = vmatpush.bf16.msra.mxu2 %v1651_v48 }
 0x258   : > { %v1478_v58 = vmax.f32 %v1329_v24, 0.0  ;;  %1707 = vmatpush.bf16.msra.mxu3 %v1652_v53 }
 0x259   : > { %v3492_v61 = vpack.c.bf16 %v1477_v47, %v1469_v49 }
 0x25a   : > { %v3495_v45 = vpack.c.bf16 %v1478_v58, %v1470_v15  ;;  %v1376_v21 = vpop.f32.mrf.mxu2  ;;  %1669 = vmatpush.bf16.msra.mxu0 %v3423_v37  ;;  %v1531_v37 = vmax.f32 %v3444_v23, 0.0 }
 0x25b   : > { %v1425_v8 = vpop.f32.mrf.mxu3  ;;  %1683 = vmatpush.bf16.msra.mxu1 %v3426_v54  ;;  %1694 = vmatpush.bf16.msra.mxu2 %v1643_v51  ;;  %v1532_v54 = vmax.f32 %v3446_v3, 0.0  ;;  %v1471_v50 = vmax.f32 %v1376_v21, 0.0 }
 0x25c   : > { %1708 = vmatpush.bf16.msra.mxu3 %v1644_v31  ;;  %v1627_v5 = vpack.c.bf16 %v1539_v44, %v1531_v37 }
 0x25d   : > { %v1628_v6 = vpack.c.bf16 %v1540_v33, %v1532_v54 }
 0x25e   : > { %v1283_v56 = vpop.f32.mrf.mxu0  ;;  %1670 = vmatpush.bf16.msra.mxu0 %v3411_v11  ;;  %v1472_v11 = vmax.f32 %v1425_v8, 0.0 }
 0x25f   : > { %v1332_v22 = vpop.f32.mrf.mxu1  ;;  %1684 = vmatpush.bf16.msra.mxu1 %v3414_v30  ;;  %1695 = vmatpush.bf16.msra.mxu2 %v1635_v39  ;;  %v1485_v52 = vmax.f32 %v1283_v56, 0.0 }
 0x260   : > { %1709 = vmatpush.bf16.msra.mxu3 %v1636_v29  ;;  %v1486_v60 = vmax.f32 %v1332_v22, 0.0 }
 0x262   : > { %v1378_v17 = vpop.f32.mrf.mxu2  ;;  %1671 = vmatpush.bf16.msra.mxu0 %v3399_v9 }
 0x263   : > { %v1479_v26 = vmax.f32 %v1378_v17, 0.0  ;;  %v1427_v36 = vpop.f32.mrf.mxu3  ;;  %1685 = vmatpush.bf16.msra.mxu1 %v3402_v38  ;;  %1696 = vmatpush.bf16.msra.mxu2 %v1627_v5 }
 0x264   : > { %v1480_v23 = vmax.f32 %v1427_v36, 0.0  ;;  %1710 = vmatpush.bf16.msra.mxu3 %v1628_v6 }
 0x265   : > { %v3509_v30 = vpack.c.bf16 %v1479_v26, %v1471_v50 }
 0x266   : > { %v3511_v3 = vpack.c.bf16 %v1480_v23, %v1472_v11  ;;  %v1285_v41 = vpop.f32.mrf.mxu0  ;;  %1672 = vmatpush.bf16.msra.mxu0 %v3387_v59 }
 0x267   : > { %v1493_v43 = vmax.f32 %v1285_v41, 0.0  ;;  %v1334_v9 = vpop.f32.mrf.mxu1  ;;  %1686 = vmatpush.bf16.msra.mxu1 %v3390_v57  ;;  %1697 = vmatpush.bf16.msra.mxu2 %v3434_v40  ;;  %v3558_v41 = vld [vmem:[%s3841_s3] sm:$0xff] }
 0x268   : > { %v1494_v38 = vmax.f32 %v1334_v9, 0.0  ;;  %1711 = vmatpush.bf16.msra.mxu3 %v3438_v27 }
 0x269   : > { %v3517_v35 = vpack.c.bf16 %v1493_v43, %v1485_v52  ;;  %1673 = vmatmul.bf16.vlgmr.msra.gmra.mxu0 %v3558_v41 }
 0x26a   : > { %v3519_v1 = vpack.c.bf16 %v1494_v38, %v1486_v60  ;;  %v1381_v13 = vpop.f32.mrf.mxu2  ;;  %1687 = vmatmul.bf16.vlgmr.msra.gmra.mxu1 %v3558_v41 }
 0x26b   : > { %v1430_v16 = vpop.f32.mrf.mxu3  ;;  %1698 = vmatpush.bf16.msra.mxu2 %v3418_v4  ;;  %v1487_v40 = vmax.f32 %v1381_v13, 0.0 }
 0x26c   : > { %1712 = vmatpush.bf16.msra.mxu3 %v3420_v55  ;;  %v1488_v46 = vmax.f32 %v1430_v16, 0.0 }
 0x26e   : > { %v1288_v59 = vpop.f32.mrf.mxu0 }
 0x26f   : > { %v1337_v20 = vpop.f32.mrf.mxu1  ;;  %1699 = vmatpush.bf16.msra.mxu2 %v3406_v25  ;;  %v1501_v42 = vmax.f32 %v1288_v59, 0.0 }
 0x270   : > { %1713 = vmatpush.bf16.msra.mxu3 %v3408_v12  ;;  %v1502_v55 = vmax.f32 %v1337_v20, 0.0 }
 0x272   : > { %v1383_v57 = vpop.f32.mrf.mxu2 }
 0x273   : > { %v1495_v19 = vmax.f32 %v1383_v57, 0.0  ;;  %v1432_v27 = vpop.f32.mrf.mxu3  ;;  %1700 = vmatpush.bf16.msra.mxu2 %v3394_v7 }
 0x274   : > { %v1496_v14 = vmax.f32 %v1432_v27, 0.0  ;;  %1714 = vmatpush.bf16.msra.mxu3 %v3396_v18 }
 0x275   : > { %v3527_v4 = vpack.c.bf16 %v1495_v19, %v1487_v40 }
 0x276   : > { %v3529_v49 = vpack.c.bf16 %v1496_v14, %v1488_v46  ;;  %v1290_v48 = vpop.f32.mrf.mxu0  ;;  %1701 = vmatmul.bf16.vlgmr.msra.gmra.mxu2 %v3558_v41 }
 0x277   : > { %v1509_v25 = vmax.f32 %v1290_v48, 0.0  ;;  %v1339_v62 = vpop.f32.mrf.mxu1  ;;  %1715 = vmatmul.bf16.vlgmr.msra.gmra.mxu3 %v3558_v41 }
 0x278   : > { %v1510_v12 = vmax.f32 %v1339_v62, 0.0 }
 0x279   : > { %v3531_v15 = vpack.c.bf16 %v1509_v25, %v1501_v42 }
 0x27a   : > { %v3533_v53 = vpack.c.bf16 %v1510_v12, %v1502_v55  ;;  %v1386_v10 = vpop.f32.mrf.mxu2 }
 0x27b   : > { %v1435_v7 = vpop.f32.mrf.mxu3  ;;  %v1503_v18 = vmax.f32 %v1386_v10, 0.0 }
 0x27c   : > { %v1504_v28 = vmax.f32 %v1435_v7, 0.0 }
 0x27e   : > { %v1293_v32 = vpop.f32.mrf.mxu0 }
 0x27f   : > { %v1342_v47 = vpop.f32.mrf.mxu1  ;;  %v1517_v63 = vmax.f32 %v1293_v32, 0.0 }
 0x280   : > { %v1518_v21 = vmax.f32 %v1342_v47, 0.0 }
 0x282   : > { %v1388_v24 = vpop.f32.mrf.mxu2 }
 0x283   : > { %v1511_v2 = vmax.f32 %v1388_v24, 0.0  ;;  %v1437_v58 = vpop.f32.mrf.mxu3 }
 0x284   : > { %v1512_v51 = vmax.f32 %v1437_v58, 0.0 }
 0x285   : > { %v3535_v31 = vpack.c.bf16 %v1511_v2, %v1503_v18 }
 0x286   : > { %v3537_v34 = vpack.c.bf16 %v1512_v51, %v1504_v28  ;;  %v1295_v8 = vpop.f32.mrf.mxu0 }
 0x287   : > { %v1525_v0 = vmax.f32 %v1295_v8, 0.0  ;;  %v1344_v44 = vpop.f32.mrf.mxu1 }
 0x288   : > { %v1526_v39 = vmax.f32 %v1344_v44, 0.0 }
 0x289   : > { %v3539_v33 = vpack.c.bf16 %v1525_v0, %v1517_v63 }
 0x28a   : > { %v3541_v29 = vpack.c.bf16 %v1526_v39, %v1518_v21  ;;  %v1391_v56 = vpop.f32.mrf.mxu2 }
 0x28b   : > { %v1440_v37 = vpop.f32.mrf.mxu3  ;;  %v1519_v6 = vmax.f32 %v1391_v56, 0.0 }
 0x28c   : > { %v1520_v26 = vmax.f32 %v1440_v37, 0.0 }
 0x28e   : > { %v3543_v22 = vpop.f32.mrf.mxu0 }
 0x28f   : > { %v3545_v54 = vpop.f32.mrf.mxu1 }
 0x292   : > { %v1393_v5 = vpop.f32.mrf.mxu2 }
 0x293   : > { %v1527_v17 = vmax.f32 %v1393_v5, 0.0  ;;  %v1442_v50 = vpop.f32.mrf.mxu3 }
 0x294   : > { %v1528_v36 = vmax.f32 %v1442_v50, 0.0 }
 0x295   : > { %v3547_v11 = vpack.c.bf16 %v1527_v17, %v1519_v6 }
 0x296   : > { %v3549_v23 = vpack.c.bf16 %v1528_v36, %v1520_v26  ;;  %v3551_v52 = vpop.f32.mrf.mxu0  ;;  %v1533_v36 = vmax.f32 %v3543_v22, 0.0 }
 0x297   : > { %v3553_v60 = vpop.f32.mrf.mxu1 }
 0x29a   : > { %v3560_v43 = vpop.f32.mrf.mxu2 }
 0x29b   : > { %v3564_v9 = vpop.f32.mrf.mxu3 }
 0x29e   : > { %v1303_v38 = vpop.f32.mrf.mxu0 }
 0x29f   : > { %v1352_v13 = vpop.f32.mrf.mxu1  ;;  %v1549_v37 = vmax.f32 %v1303_v38, 0.0  ;;  %v1534_v38 = vmax.f32 %v3545_v54, 0.0 }
 0x2a0   : > { %v1550_v17 = vmax.f32 %v1352_v13, 0.0  ;;  %v1542_v13 = vmax.f32 %v3553_v60, 0.0 }
 0x2a2   : > { %v3568_v16 = vpop.f32.mrf.mxu2 }
 0x2a3   : > { %v3570_v59 = vpop.f32.mrf.mxu3 }
 0x2a6   : > { %v1305_v20 = vpop.f32.mrf.mxu0 }
 0x2a7   : > { %v1354_v57 = vpop.f32.mrf.mxu1  ;;  %v1557_v5 = vmax.f32 %v1305_v20, 0.0 }
 0x2a8   : > { %v1558_v50 = vmax.f32 %v1354_v57, 0.0 }
 0x2aa   : > { %v3572_v40 = vpop.f32.mrf.mxu2  ;;  %v1638_v20 = vpack.c.bf16 %v1558_v50, %v1550_v17 }
 0x2ab   : > { %v3574_v19 = vpop.f32.mrf.mxu3 }
 0x2ae   : > { %v1308_v27 = vpop.f32.mrf.mxu0 }
 0x2af   : > { %v1357_v46 = vpop.f32.mrf.mxu1  ;;  %v1565_v51 = vmax.f32 %v1308_v27, 0.0  ;;  %v1541_v27 = vmax.f32 %v3551_v52, 0.0 }
 0x2b0   : > { %v1566_v8 = vmax.f32 %v1357_v46, 0.0  ;;  %v2735_v46 = vmov 0  }
 0x2b1   : > { %2577 = vset.pattern.permute.xlu0 %v2735_v46 }
 0x2b2   : > { %v3576_v14 = vpop.f32.mrf.mxu2 }
 0x2b3   : > { %v3578_v42 = vpop.f32.mrf.mxu3 }
 0x2b6   : > { %v1310_v55 = vpop.f32.mrf.mxu0 }
 0x2b7   : > { %v1359_v48 = vpop.f32.mrf.mxu1  ;;  %v1573_v63 = vmax.f32 %v1310_v55, 0.0  ;;  %v1637_v55 = vpack.c.bf16 %v1557_v5, %v1549_v37 }
 0x2b8   : > { %v1574_v0 = vmax.f32 %v1359_v48, 0.0  ;;  %v3591_v48 = vld [vmem:[%s3842_s4] sm:$0x7] }
 0x2b9   : > { %v1645_v6 = vpack.c.bf16 %v1573_v63, %v1565_v51  ;;  %1924 = vperm.xlu0 %2577, %v3591_v48  }
 0x2ba   : > { %v3580_v25 = vpop.f32.mrf.mxu2  ;;  %v1646_v26 = vpack.c.bf16 %v1574_v0, %v1566_v8  ;;  %v2737_v0 = vmov 4  }
 0x2bb   : > { %v3582_v62 = vpop.f32.mrf.mxu3  ;;  %v1567_v51 = vmax.f32 %v3580_v25, 0.0  ;;  %2581 = vset.pattern.permute.xlu2 %v2737_v0  ;;  %v1551_v25 = vmax.f32 %v3572_v40, 0.0 }
 0x2bc   : > { %v1568_v63 = vmax.f32 %v3582_v62, 0.0  ;;  %2036 = vperm.xlu2 %2581, %v3591_v48   ;;  %v1552_v62 = vmax.f32 %v3574_v19, 0.0  ;;  %v2740_v19 = vmov 5  }
 0x2be   : > { %v1313_v12 = vpop.f32.mrf.mxu0 }
 0x2bf   : > { %v1362_v10 = vpop.f32.mrf.mxu1  ;;  %v1581_v47 = vmax.f32 %v1313_v12, 0.0  ;;  %v2736_v12 = vmov 2  }
 0x2c0   : > { %v1582_v24 = vmax.f32 %v1362_v10, 0.0  ;;  %2579 = vset.pattern.permute.xlu1 %v2736_v12 }
 0x2c1   : > { %1980 = vperm.xlu1 %2579, %v3591_v48  }
 0x2c2   : > { %v1408_v7 = vpop.f32.mrf.mxu2 }
 0x2c3   : > { %v3584_v32 = vpop.f32.mrf.mxu3 }
 0x2c4   : > { %v1576_v60 = vmax.f32 %v3584_v32, 0.0  ;;  %2582 = vset.pattern.permute.xlu2 %v2740_v19 }
 0x2c5   : > { %2064 = vperm.xlu2 %2582, %v3591_v48  }
 0x2c6   : > { %v1315_v18 = vpop.f32.mrf.mxu0 }
 0x2c7   : > { %v1589_v2 = vmax.f32 %v1315_v18, 0.0  ;;  %v1364_v58 = vpop.f32.mrf.mxu1  ;;  %v1629_v18 = vpack.c.bf16 %v1541_v27, %v1533_v36 }
 0x2c8   : > { %v1590_v28 = vmax.f32 %v1364_v58, 0.0  ;;  %v1630_v58 = vpack.c.bf16 %v1542_v13, %v1534_v38 }
 0x2c9   : > { %v1653_v21 = vpack.c.bf16 %v1589_v2, %v1581_v47  ;;  %v1575_v2 = vmax.f32 %v1408_v7, 0.0  ;;  %v1560_v7 = vmax.f32 %v3578_v42, 0.0  ;;  %v1544_v42 = vmax.f32 %v3570_v59, 0.0 }
 0x2ca   : > { %v1654_v44 = vpack.c.bf16 %v1590_v28, %v1582_v24  ;;  %v1411_v39 = vpop.f32.mrf.mxu2 }
 0x2cb   : > { %v1460_v56 = vpop.f32.mrf.mxu3  ;;  %1721 = vmatpush.bf16.msrb.mxu0 %v1653_v21  ;;  %v1583_v22 = vmax.f32 %v1411_v39, 0.0  ;;  %v1559_v21 = vmax.f32 %v3576_v14, 0.0  ;;  %v1647_v8 = vpack.c.bf16 %v1575_v2, %v1567_v51  ;;  %v2738_v39 = vmov 1  }
 0x2cc   : > { %1735 = vmatpush.bf16.msrb.mxu1 %v1654_v44  ;;  %v1584_v47 = vmax.f32 %v1460_v56, 0.0  ;;  %v1648_v44 = vpack.c.bf16 %v1576_v60, %v1568_v63  ;;  %2578 = vset.pattern.permute.xlu0 %v2738_v39  ;;  %v1543_v14 = vmax.f32 %v3568_v16, 0.0  ;;  %v2739_v56 = vmov 3  }
 0x2cd   : > { %v1639_v32 = vpack.c.bf16 %v1559_v21, %v1551_v25  ;;  %2580 = vset.pattern.permute.xlu1 %v2739_v56  ;;  %1952 = vperm.xlu0 %2578, %v3591_v48   ;;  %v1640_v37 = vpack.c.bf16 %v1560_v7, %v1552_v62 }
 0x2ce   : > { %2008 = vperm.xlu1 %2580, %v3591_v48  }
 0x2cf   : > { %1722 = vmatpush.bf16.msrb.mxu0 %v1645_v6 }
 0x2d0   : > { %1736 = vmatpush.bf16.msrb.mxu1 %v1646_v26 }
 0x2d2   : > { %v1413_v57 = vpop.f32.mrf.mxu2 }
 0x2d3   : > { %v1591_v52 = vmax.f32 %v1413_v57, 0.0  ;;  %v1462_v10 = vpop.f32.mrf.mxu3  ;;  %1723 = vmatpush.bf16.msrb.mxu0 %v1637_v55 }
 0x2d4   : > { %v1592_v24 = vmax.f32 %v1462_v10, 0.0  ;;  %1737 = vmatpush.bf16.msrb.mxu1 %v1638_v20 }
 0x2d5   : > { %v1655_v54 = vpack.c.bf16 %v1591_v52, %v1583_v22 }
 0x2d6   : > { %v1656_v28 = vpack.c.bf16 %v1592_v24, %v1584_v47 }
 0x2d7   : > { %1724 = vmatpush.bf16.msrb.mxu0 %v1629_v18  ;;  %1749 = vmatpush.bf16.msrb.mxu2 %v1655_v54 }
 0x2d8   : > { %1738 = vmatpush.bf16.msrb.mxu1 %v1630_v58  ;;  %1763 = vmatpush.bf16.msrb.mxu3 %v1656_v28 }
 0x2db   : > { %1725 = vmatpush.bf16.msrb.mxu0 %v3539_v33  ;;  %1750 = vmatpush.bf16.msrb.mxu2 %v1647_v8  ;;  %v1535_v33 = vmax.f32 %v3560_v43, 0.0  ;;  %v2741_v43 = vmov 7  }
 0x2dc   : > { %1739 = vmatpush.bf16.msrb.mxu1 %v3541_v29  ;;  %1764 = vmatpush.bf16.msrb.mxu3 %v1648_v44  ;;  %v1536_v29 = vmax.f32 %v3564_v9, 0.0 }
 0x2dd   : > { %v1631_v16 = vpack.c.bf16 %v1543_v14, %v1535_v33  ;;  %2585 = vset.pattern.permute.xlu0 %v2741_v43  ;;  %2584 = vset.pattern.permute.xlu2 %v2741_v43 }
 0x2de   : > { %v1632_v40 = vpack.c.bf16 %v1544_v42, %v1536_v29  ;;  %2120 = vperm.xlu2 %2584, %v3591_v48  }
 0x2df   : > { %1726 = vmatpush.bf16.msrb.mxu0 %v3531_v15  ;;  %1751 = vmatpush.bf16.msrb.mxu2 %v1639_v32  ;;  %v2742_v15 = vmov 6  }
 0x2e0   : > { %1740 = vmatpush.bf16.msrb.mxu1 %v3533_v53  ;;  %1765 = vmatpush.bf16.msrb.mxu3 %v1640_v37 }
 0x2e1   : > { %2583 = vset.pattern.permute.xlu1 %v2742_v15 }
 0x2e2   : > { %2092 = vperm.xlu1 %2583, %v3591_v48  }
 0x2e3   : > { %1727 = vmatpush.bf16.msrb.mxu0 %v3517_v35  ;;  %1752 = vmatpush.bf16.msrb.mxu2 %v1631_v16 }
 0x2e4   : > { %1741 = vmatpush.bf16.msrb.mxu1 %v3519_v1  ;;  %1766 = vmatpush.bf16.msrb.mxu3 %v1632_v40 }
 0x2e7   : > { %1728 = vmatpush.bf16.msrb.mxu0 %v3492_v61  ;;  %1753 = vmatpush.bf16.msrb.mxu2 %v3547_v11  ;;  %v1688_v61 = vpop.f32.mrf.mxu1  ;;  %v1674_v11 = vpop.f32.mrf.mxu0 }
 0x2e8   : > { %1742 = vmatpush.bf16.msrb.mxu1 %v3495_v45  ;;  %1767 = vmatpush.bf16.msrb.mxu3 %v3549_v23  ;;  %v1791_v45 = vrot.slane %v1688_v61, 4  ;;  %v1785_v9 = vrot.slane %v1674_v11, 4 }
 0x2ea   : > { %1729 = vmatmul.bf16.vlgmr.msrb.gmra.mxu0 %v3558_v41  ;;  %v1792_v35 = vmax.f32 %v1688_v61, %v1791_v45  ;;  %v1786_v5 = vmax.f32 %v1674_v11, %v1785_v9 }
 0x2eb   : > { %1754 = vmatpush.bf16.msrb.mxu2 %v3535_v31  ;;  %1743 = vmatmul.bf16.vlgmr.msrb.gmra.mxu1 %v3558_v41 }
 0x2ec   : > { %1768 = vmatpush.bf16.msrb.mxu3 %v3537_v34  ;;  %v1793_v1 = vrot.slane %v1792_v35, 2  ;;  %v1787_v50 = vrot.slane %v1786_v5, 2 }
 0x2ee   : > { %v1794_v34 = vmax.f32 %v1792_v35, %v1793_v1  ;;  %v1788_v27 = vmax.f32 %v1786_v5, %v1787_v50 }
 0x2ef   : > { %1755 = vmatpush.bf16.msrb.mxu2 %v3527_v4  ;;  %v1690_v35 = vpop.f32.mrf.mxu1 }
 0x2f0   : > { %1769 = vmatpush.bf16.msrb.mxu3 %v3529_v49  ;;  %v1795_v59 = vrot.slane %v1794_v34, 1  ;;  %v1789_v38 = vrot.slane %v1788_v27, 1 }
 0x2f2   : > { %v1796_v6 = vmax.f32 %v1794_v34, %v1795_v59  ;;  %v1790_v57 = vmax.f32 %v1788_v27, %v1789_v38 }
 0x2f3   : > { %1756 = vmatpush.bf16.msrb.mxu2 %v3509_v30 }
 0x2f4   : > { %1770 = vmatpush.bf16.msrb.mxu3 %v3511_v3  ;;  %v1834_v26 = vsub.f32 %v1688_v61, %v1796_v6  ;;  %v1833_v52 = vsub.f32 %v1674_v11, %v1790_v57  ;;  %v1676_v11 = vpop.f32.mrf.mxu0 }
 0x2f6   : > { %1757 = vmatmul.bf16.vlgmr.msrb.gmra.mxu2 %v3558_v41  ;;  %v1843_v46 = vmul.f32 1.442695, %v1834_v26  ;;  %v1841_v47 = vmul.f32 1.442695, %v1833_v52 }
 0x2f7   : > { %1771 = vmatmul.bf16.vlgmr.msrb.gmra.mxu3 %v3558_v41 }
 0x2f8   : > { %2586 = vpow2.f32 %v1843_v46 }
 0x2f9   : > { %v1702_v23 = vpop.f32.mrf.mxu2 }
 0x2fa   : > { %v1716_v53 = vpop.f32.mrf.mxu3  ;;  %v1797_v49 = vrot.slane %v1702_v23, 4 }
 0x2fb   : > { %v1803_v31 = vrot.slane %v1716_v53, 4 }
 0x2fc   : > { %v1798_v3 = vmax.f32 %v1702_v23, %v1797_v49 }
 0x2fd   : > { %v1804_v4 = vmax.f32 %v1716_v53, %v1803_v31 }
 0x2fe   : > { %v1799_v41 = vrot.slane %v1798_v3, 2  ;;  %v2587_v18 = vpop.eup %2586 }
 0x2ff   : > { %v1805_v30 = vrot.slane %v1804_v4, 2  ;;  %v1863_v2 = vrot.slane %v2587_v18, 4 }
 0x300   : > { %v1800_v55 = vmax.f32 %v1798_v3, %v1799_v41 }
 0x301   : > { %v1806_v17 = vmax.f32 %v1804_v4, %v1805_v30  ;;  %v1864_v54 = vadd.f32 %v2587_v18, %v1863_v2  ;;  %v1704_v1 = vpop.f32.mrf.mxu2 }
 0x302   : > { %v1801_v13 = vrot.slane %v1800_v55, 1  ;;  %v1718_v45 = vpop.f32.mrf.mxu3 }
 0x303   : > { %v1807_v36 = vrot.slane %v1806_v17, 1  ;;  %v1865_v60 = vrot.slane %v1864_v54, 2 }
 0x304   : > { %v1802_v12 = vmax.f32 %v1800_v55, %v1801_v13 }
 0x305   : > { %v1808_v48 = vmax.f32 %v1806_v17, %v1807_v36  ;;  %v1866_v63 = vadd.f32 %v1865_v60, %v1864_v54 }
 0x306   : > { %v1835_v10 = vsub.f32 %v1702_v23, %v1802_v12 }
 0x307   : > { %v1836_v20 = vsub.f32 %v1716_v53, %v1808_v48  ;;  %v1867_v7 = vrot.slane %v1866_v63, 1 }
 0x308   : > { %v1845_v24 = vmul.f32 1.442695, %v1835_v10 }
 0x309   : > { %v1847_v22 = vmul.f32 1.442695, %v1836_v20  ;;  %v1868_v62 = vadd.f32 %v1867_v7, %v1866_v63 }
 0x30b   : > { %2588 = vpow2.f32 %v1847_v22 }
 0x30c   : > { %2590 = vpow2.f32 %v1841_v47 }
 0x30d   : > { %2592 = vpow2.f32 %v1845_v24 }
 0x30e   : > { %2594 = vrcp.f32 %v1868_v62 }
 0x311   : > { %v2589_v58 = vpop.eup %2588 }
 0x312   : > { %v1875_v28 = vrot.slane %v2589_v58, 4  ;;  %v2591_v51 = vpop.eup %2590 }
 0x313   : > { %v2593_v21 = vpop.eup %2592  ;;  %v1857_v0 = vrot.slane %v2591_v51, 4 }
 0x314   : > { %v1876_v8 = vadd.f32 %v2589_v58, %v1875_v28  ;;  %v1869_v44 = vrot.slane %v2593_v21, 4  ;;  %v2595_v61 = vpop.eup %2594 }
 0x315   : > { %v1858_v25 = vadd.f32 %v2591_v51, %v1857_v0  ;;  %v3636_v34 = vmul.f32 %v2595_v61, %v2587_v18 }
 0x316   : > { %v1877_v39 = vrot.slane %v1876_v8, 2  ;;  %v1870_v14 = vadd.f32 %v2593_v21, %v1869_v44  ;;  %v3652_v55 = vpop.permute.xlu2 %2036 }
 0x317   : > { %v1859_v56 = vrot.slane %v1858_v25, 2  ;;  %v1928_v5 = vperm.slane %v3636_v34, 0  ;;  %v1956_v46 = vperm.slane %v3636_v34, 1  ;;  %v1984_v57 = vperm.slane %v3636_v34, 2 }
 0x318   : > { %v1878_v32 = vadd.f32 %v1877_v39, %v1876_v8  ;;  %v1871_v42 = vrot.slane %v1870_v14, 2  ;;  %v2040_v7 = vperm.slane %v3636_v34, 4  ;;  %v2012_v61 = vperm.slane %v3636_v34, 3 }
 0x319   : > { %v1860_v33 = vadd.f32 %v1859_v56, %v1858_v25 }
 0x31a   : > { %v1879_v37 = vrot.slane %v1878_v32, 1  ;;  %v1872_v29 = vadd.f32 %v1871_v42, %v1870_v14  ;;  %v2048_v42 = vmul.f32 %v2040_v7, %v3652_v55 }
 0x31b   : > { %v1861_v40 = vrot.slane %v1860_v33, 1 }
 0x31c   : > { %v1880_v16 = vadd.f32 %v1879_v37, %v1878_v32  ;;  %v1873_v19 = vrot.slane %v1872_v29, 1 }
 0x31d   : > { %v1862_v43 = vadd.f32 %v1861_v40, %v1860_v33 }
 0x31e   : > { %2596 = vrcp.f32 %v1880_v16  ;;  %v1874_v15 = vadd.f32 %v1873_v19, %v1872_v29 }
 0x31f   : > { %2598 = vrcp.f32 %v1862_v43 }
 0x320   : > { %2600 = vrcp.f32 %v1874_v15 }
 0x321   : > { %2602 = vtanh.f32 %v1690_v35 }
 0x322   : > { %2604 = vtanh.f32 %v1718_v45 }
 0x323   : > { %2606 = vtanh.f32 %v1676_v11  ;;  %v3688_v11 = vpop.permute.xlu2 %2064 }
 0x324   : > { %v2597_v31 = vpop.eup %2596  ;;  %2608 = vtanh.f32 %v1704_v1 }
 0x325   : > { %v3638_v23 = vmul.f32 %v2597_v31, %v2589_v58  ;;  %v2599_v9 = vpop.eup %2598 }
 0x326   : > { %v2601_v49 = vpop.eup %2600  ;;  %v3642_v59 = vmul.f32 %v2599_v9, %v2591_v51 }
 0x327   : > { %v3644_v30 = vmul.f32 %v2601_v49, %v2593_v21  ;;  %v1930_v3 = vperm.slane %v3638_v23, 0  ;;  %v2603_v6 = vpop.eup %2602  ;;  %v1958_v48 = vperm.slane %v3638_v23, 1  ;;  %v1986_v12 = vperm.slane %v3638_v23, 2 }
 0x328   : > { %v2605_v17 = vpop.eup %2604  ;;  %v1927_v50 = vperm.slane %v3642_v59, 0  ;;  %v1955_v47 = vperm.slane %v3642_v59, 1  ;;  %v1983_v18 = vperm.slane %v3642_v59, 2  ;;  %v2042_v44 = vperm.slane %v3638_v23, 4 }
 0x329   : > { %v1929_v41 = vperm.slane %v3644_v30, 0  ;;  %v2607_v27 = vpop.eup %2606  ;;  %v1957_v24 = vperm.slane %v3644_v30, 1  ;;  %v1985_v2 = vperm.slane %v3644_v30, 2  ;;  %v2039_v32 = vperm.slane %v3642_v59, 4 }
 0x32a   : > { %v2609_v38 = vpop.eup %2608  ;;  %v2041_v56 = vperm.slane %v3644_v30, 4  ;;  %v2050_v37 = vmul.f32 %v2042_v44, %v3652_v55  ;;  %v2011_v15 = vperm.slane %v3642_v59, 3  ;;  %v2013_v1 = vperm.slane %v3644_v30, 3 }
 0x32b   : > { %v3634_v53 = vpop.permute.xlu0 %1924  ;;  %v2047_v19 = vmul.f32 %v2039_v32, %v3652_v55  ;;  %v2014_v31 = vperm.slane %v3638_v23, 3  ;;  %v2124_v44 = vperm.slane %v3636_v34, 7  ;;  %v2123_v32 = vperm.slane %v3642_v59, 7 }
 0x32c   : > { %v1936_v26 = vmul.f32 %v1928_v5, %v3634_v53  ;;  %v1938_v36 = vmul.f32 %v1930_v3, %v3634_v53  ;;  %v1935_v13 = vmul.f32 %v1927_v50, %v3634_v53  ;;  %v1937_v20 = vmul.f32 %v1929_v41, %v3634_v53 }
 0x32d   : > { %v2049_v43 = vmul.f32 %v2041_v56, %v3652_v55  ;;  %v2067_v5 = vperm.slane %v3642_v59, 5  ;;  %v2068_v3 = vperm.slane %v3636_v34, 5  ;;  %v2069_v50 = vperm.slane %v3644_v30, 5 }
 0x32e   : > { %v1944_v52 = vadd.f32 %v2603_v6, %v1936_v26  ;;  %v1946_v10 = vadd.f32 %v2605_v17, %v1938_v36  ;;  %v1943_v60 = vadd.f32 %v2607_v27, %v1935_v13  ;;  %v1945_v28 = vadd.f32 %v2609_v38, %v1937_v20 }
 0x32f   : > { %v2070_v41 = vperm.slane %v3638_v23, 5  ;;  %v2075_v27 = vmul.f32 %v2067_v5, %v3688_v11  ;;  %v2077_v13 = vmul.f32 %v2069_v50, %v3688_v11  ;;  %v2125_v56 = vperm.slane %v3644_v30, 7 }
 0x331   : > { %v2078_v20 = vmul.f32 %v2070_v41, %v3688_v11 }
 0x333   : > { %v3640_v4 = vpop.permute.xlu1 %1980 }
 0x334   : > { %v1992_v54 = vmul.f32 %v1984_v57, %v3640_v4  ;;  %v1994_v58 = vmul.f32 %v1986_v12, %v3640_v4  ;;  %v1991_v8 = vmul.f32 %v1983_v18, %v3640_v4  ;;  %v1993_v0 = vmul.f32 %v1985_v2, %v3640_v4 }
 0x335   : > { %v2097_v2 = vperm.slane %v3644_v30, 6 }
 0x33f   : > { %v3660_v22 = vpop.permute.xlu0 %1952 }
 0x340   : > { %v1963_v51 = vmul.f32 %v1955_v47, %v3660_v22  ;;  %v1964_v63 = vmul.f32 %v1956_v46, %v3660_v22  ;;  %v3670_v21 = vpop.permute.xlu1 %2008  ;;  %v1965_v39 = vmul.f32 %v1957_v24, %v3660_v22  ;;  %v1966_v25 = vmul.f32 %v1958_v48, %v3660_v22 }
 0x341   : > { %v2019_v9 = vmul.f32 %v2011_v15, %v3670_v21  ;;  %v2020_v49 = vmul.f32 %v2012_v61, %v3670_v21  ;;  %v2021_v6 = vmul.f32 %v2013_v1, %v3670_v21  ;;  %v2022_v17 = vmul.f32 %v2014_v31, %v3670_v21 }
 0x342   : > { %v1971_v62 = vadd.f32 %v1963_v51, %v1943_v60  ;;  %v1972_v14 = vadd.f32 %v1964_v63, %v1944_v52  ;;  %v1973_v33 = vadd.f32 %v1965_v39, %v1945_v28  ;;  %v1974_v29 = vadd.f32 %v1966_v25, %v1946_v10 }
 0x343   : > { %v2076_v46 = vmul.f32 %v2068_v3, %v3688_v11  ;;  %v2095_v10 = vperm.slane %v3642_v59, 6  ;;  %v2096_v47 = vperm.slane %v3636_v34, 6  ;;  %v2126_v39 = vperm.slane %v3638_v23, 7 }
 0x344   : > { %v1999_v16 = vadd.f32 %v1991_v8, %v1971_v62  ;;  %v2000_v40 = vadd.f32 %v1992_v54, %v1972_v14  ;;  %v2001_v45 = vadd.f32 %v1993_v0, %v1973_v33  ;;  %v2002_v35 = vadd.f32 %v1994_v58, %v1974_v29  ;;  %v3714_v14 = vpop.permute.xlu2 %2120 }
 0x345   : > { %v2098_v54 = vperm.slane %v3638_v23, 6  ;;  %v2132_v33 = vmul.f32 %v2124_v44, %v3714_v14  ;;  %v2134_v29 = vmul.f32 %v2126_v39, %v3714_v14  ;;  %v2133_v34 = vmul.f32 %v2125_v56, %v3714_v14 }
 0x346   : > { %v2027_v26 = vadd.f32 %v2019_v9, %v1999_v16  ;;  %v2028_v36 = vadd.f32 %v2020_v49, %v2000_v40  ;;  %v2029_v48 = vadd.f32 %v2021_v6, %v2001_v45  ;;  %v2030_v38 = vadd.f32 %v2022_v17, %v2002_v35 }
 0x347   : > { %v2131_v16 = vmul.f32 %v2123_v32, %v3714_v14 }
 0x348   : > { %v2055_v12 = vadd.f32 %v2047_v19, %v2027_v26  ;;  %v2056_v52 = vadd.f32 %v2048_v42, %v2028_v36  ;;  %v2057_v24 = vadd.f32 %v2049_v43, %v2029_v48  ;;  %v2058_v18 = vadd.f32 %v2050_v37, %v2030_v38 }
 0x34a   : > { %v2083_v58 = vadd.f32 %v2075_v27, %v2055_v12  ;;  %v2084_v60 = vadd.f32 %v2076_v46, %v2056_v52  ;;  %v2085_v63 = vadd.f32 %v2077_v13, %v2057_v24  ;;  %v2086_v8 = vadd.f32 %v2078_v20, %v2058_v18 }
 0x354   : > { %v3702_v57 = vpop.permute.xlu1 %2092 }
 0x355   : > { %v2103_v28 = vmul.f32 %v2095_v10, %v3702_v57  ;;  %v2104_v51 = vmul.f32 %v2096_v47, %v3702_v57  ;;  %v2105_v0 = vmul.f32 %v2097_v2, %v3702_v57  ;;  %v2106_v7 = vmul.f32 %v2098_v54, %v3702_v57 }
 0x357   : > { %v2112_v25 = vadd.f32 %v2104_v51, %v2084_v60  ;;  %v2114_v62 = vadd.f32 %v2106_v7, %v2086_v8  ;;  %v2111_v42 = vadd.f32 %v2103_v28, %v2083_v58  ;;  %v2113_v37 = vadd.f32 %v2105_v0, %v2085_v63 }
 0x359   : > { %v2140_v23 = vadd.f32 %v2132_v33, %v2112_v25  ;;  %v2142_v40 = vadd.f32 %v2134_v29, %v2114_v62  ;;  %v2139_v61 = vadd.f32 %v2131_v16, %v2111_v42  ;;  %v2141_v59 = vadd.f32 %v2133_v34, %v2113_v37 }
 0x35b   : > { %v2148_v45 = vmax.f32 %v2140_v23, 0.0  ;;  %v2150_v35 = vmax.f32 %v2142_v40, 0.0  ;;  %v2147_v31 = vmax.f32 %v2139_v61, 0.0  ;;  %v2149_v9 = vmax.f32 %v2141_v59, 0.0 }
 0x35d   : > { %v2156_v49 = vmin.f32 %v2148_v45, 1.0  ;;  %v2158_v3 = vmin.f32 %v2150_v35, 1.0  ;;  %v2155_v17 = vmin.f32 %v2147_v31, 1.0  ;;  %v2157_v50 = vmin.f32 %v2149_v9, 1.0 }
 0x35f   : > { %v2171_v41 = vrot.slane %v2156_v49, 4  ;;  %v2172_v36 = vrot.slane %v2158_v3, 4 }
 0x361   : > { %v2176_v46 = vsel %vm2175_vm1, %v2155_v17, %v2171_v41  ;;  %v2177_v38 = vsel %vm2175_vm1, %v2157_v50, %v2172_v36 }
 0x362   : > { %2184 = vst [vmem:[%s3725_s28] sm:$0x77] %v2176_v46 }
 0x363   : > { %2185 = vst [vmem:[%s3725_s28 + $0x8] sm:$0x77] %v2177_v38 }
 0x367   : > { %v1730_v19 = vpop.f32.mrf.mxu0 }
 0x368   : > { %v1744_v43 = vpop.f32.mrf.mxu1  ;;  %v1809_v15 = vrot.slane %v1730_v19, 4 }
 0x369   : > { %v1815_v30 = vrot.slane %v1744_v43, 4 }
 0x36a   : > { %v1810_v1 = vmax.f32 %v1730_v19, %v1809_v15 }
 0x36b   : > { %v1816_v5 = vmax.f32 %v1744_v43, %v1815_v30 }
 0x36c   : > { %v1811_v6 = vrot.slane %v1810_v1, 2 }
 0x36d   : > { %v1817_v26 = vrot.slane %v1816_v5, 2 }
 0x36e   : > { %v1812_v27 = vmax.f32 %v1810_v1, %v1811_v6 }
 0x36f   : > { %v1818_v48 = vmax.f32 %v1816_v5, %v1817_v26  ;;  %v1732_v26 = vpop.f32.mrf.mxu0 }
 0x370   : > { %v1813_v13 = vrot.slane %v1812_v27, 1  ;;  %v1746_v1 = vpop.f32.mrf.mxu1 }
 0x371   : > { %v1819_v20 = vrot.slane %v1818_v48, 1 }
 0x372   : > { %v1814_v12 = vmax.f32 %v1812_v27, %v1813_v13 }
 0x373   : > { %v1820_v52 = vmax.f32 %v1818_v48, %v1819_v20 }
 0x374   : > { %v1837_v10 = vsub.f32 %v1730_v19, %v1814_v12 }
 0x375   : > { %v1838_v47 = vsub.f32 %v1744_v43, %v1820_v52 }
 0x376   : > { %v1849_v24 = vmul.f32 1.442695, %v1837_v10 }
 0x377   : > { %v1851_v18 = vmul.f32 1.442695, %v1838_v47 }
 0x378   : > { %2610 = vpow2.f32 %v1849_v24 }
 0x379   : > { %2612 = vpow2.f32 %v1851_v18  ;;  %v1758_v2 = vpop.f32.mrf.mxu2 }
 0x37a   : > { %v1772_v54 = vpop.f32.mrf.mxu3  ;;  %v1821_v58 = vrot.slane %v1758_v2, 4 }
 0x37b   : > { %v1827_v60 = vrot.slane %v1772_v54, 4 }
 0x37c   : > { %v1822_v28 = vmax.f32 %v1758_v2, %v1821_v58 }
 0x37d   : > { %v1828_v51 = vmax.f32 %v1772_v54, %v1827_v60 }
 0x37e   : > { %v2611_v63 = vpop.eup %2610  ;;  %v1823_v8 = vrot.slane %v1822_v28, 2 }
 0x37f   : > { %v2613_v0 = vpop.eup %2612  ;;  %v1829_v7 = vrot.slane %v1828_v51, 2  ;;  %v1881_v44 = vrot.slane %v2611_v63, 4 }
 0x380   : > { %v1887_v39 = vrot.slane %v2613_v0, 4  ;;  %v1824_v25 = vmax.f32 %v1822_v28, %v1823_v8 }
 0x381   : > { %v1830_v62 = vmax.f32 %v1828_v51, %v1829_v7  ;;  %v1882_v32 = vadd.f32 %v2611_v63, %v1881_v44 }
 0x382   : > { %v1888_v56 = vadd.f32 %v2613_v0, %v1887_v39  ;;  %v1825_v42 = vrot.slane %v1824_v25, 1 }
 0x383   : > { %v1831_v37 = vrot.slane %v1830_v62, 1  ;;  %v1883_v33 = vrot.slane %v1882_v32, 2 }
 0x384   : > { %v1889_v29 = vrot.slane %v1888_v56, 2  ;;  %v1826_v16 = vmax.f32 %v1824_v25, %v1825_v42 }
 0x385   : > { %v1832_v34 = vmax.f32 %v1830_v62, %v1831_v37  ;;  %v1884_v23 = vadd.f32 %v1883_v33, %v1882_v32  ;;  %v1774_v33 = vpop.f32.mrf.mxu3 }
 0x386   : > { %v1890_v40 = vadd.f32 %v1889_v29, %v1888_v56  ;;  %v1839_v19 = vsub.f32 %v1758_v2, %v1826_v16 }
 0x387   : > { %v1840_v43 = vsub.f32 %v1772_v54, %v1832_v34  ;;  %v1885_v15 = vrot.slane %v1884_v23, 1 }
 0x388   : > { %v1891_v61 = vrot.slane %v1890_v40, 1  ;;  %v1853_v59 = vmul.f32 1.442695, %v1839_v19 }
 0x389   : > { %v1855_v45 = vmul.f32 1.442695, %v1840_v43  ;;  %v1886_v30 = vadd.f32 %v1885_v15, %v1884_v23 }
 0x38a   : > { %v1892_v35 = vadd.f32 %v1891_v61, %v1890_v40  ;;  %2614 = vpow2.f32 %v1853_v59  ;;  %v1760_v59 = vpop.f32.mrf.mxu2 }
 0x38b   : > { %2616 = vpow2.f32 %v1855_v45 }
 0x38c   : > { %2618 = vrcp.f32 %v1892_v35 }
 0x38d   : > { %2620 = vrcp.f32 %v1886_v30 }
 0x38e   : > { %2622 = vtanh.f32 %v1746_v1 }
 0x38f   : > { %2624 = vtanh.f32 %v1732_v26 }
 0x390   : > { %v2615_v31 = vpop.eup %2614 }
 0x391   : > { %v2617_v9 = vpop.eup %2616  ;;  %v1893_v49 = vrot.slane %v2615_v31, 4 }
 0x392   : > { %v2619_v5 = vpop.eup %2618  ;;  %v1899_v3 = vrot.slane %v2617_v9, 4 }
 0x393   : > { %v2621_v6 = vpop.eup %2620  ;;  %v3729_v17 = vmul.f32 %v2619_v5, %v2613_v0  ;;  %v1894_v50 = vadd.f32 %v2615_v31, %v1893_v49 }
 0x394   : > { %v1900_v41 = vadd.f32 %v2617_v9, %v1899_v3  ;;  %v3733_v38 = vmul.f32 %v2621_v6, %v2611_v63  ;;  %v2623_v52 = vpop.eup %2622 }
 0x395   : > { %v1895_v36 = vrot.slane %v1894_v50, 2  ;;  %v1932_v27 = vperm.slane %v3729_v17, 0  ;;  %v1960_v46 = vperm.slane %v3729_v17, 1  ;;  %v1988_v12 = vperm.slane %v3729_v17, 2  ;;  %v2625_v44 = vpop.eup %2624 }
 0x396   : > { %v1901_v48 = vrot.slane %v1900_v41, 2  ;;  %v2016_v2 = vperm.slane %v3729_v17, 3  ;;  %v1931_v58 = vperm.slane %v3733_v38, 0  ;;  %v1959_v60 = vperm.slane %v3733_v38, 1 }
 0x397   : > { %v1896_v13 = vadd.f32 %v1895_v36, %v1894_v50  ;;  %v1940_v20 = vmul.f32 %v1932_v27, %v3634_v53  ;;  %v1968_v18 = vmul.f32 %v1960_v46, %v3660_v22  ;;  %v1996_v63 = vmul.f32 %v1988_v12, %v3640_v4 }
 0x398   : > { %v1902_v10 = vadd.f32 %v1901_v48, %v1900_v41  ;;  %v1939_v0 = vmul.f32 %v1931_v58, %v3634_v53  ;;  %v1987_v7 = vperm.slane %v3733_v38, 2  ;;  %v2024_v25 = vmul.f32 %v2016_v2, %v3670_v21 }
 0x399   : > { %v1897_v47 = vrot.slane %v1896_v13, 1  ;;  %v1948_v24 = vadd.f32 %v2623_v52, %v1940_v20  ;;  %v2044_v62 = vperm.slane %v3729_v17, 4  ;;  %v1967_v56 = vmul.f32 %v1959_v60, %v3660_v22 }
 0x39a   : > { %v1903_v54 = vrot.slane %v1902_v10, 1  ;;  %v1947_v32 = vadd.f32 %v2625_v44, %v1939_v0  ;;  %v2015_v42 = vperm.slane %v3733_v38, 3  ;;  %v1995_v16 = vmul.f32 %v1987_v7, %v3640_v4 }
 0x39b   : > { %v1898_v28 = vadd.f32 %v1897_v47, %v1896_v13  ;;  %v1976_v51 = vadd.f32 %v1968_v18, %v1948_v24  ;;  %v2043_v34 = vperm.slane %v3733_v38, 4  ;;  %v2052_v23 = vmul.f32 %v2044_v62, %v3652_v55 }
 0x39c   : > { %v1904_v8 = vadd.f32 %v1903_v54, %v1902_v10  ;;  %v1975_v29 = vadd.f32 %v1967_v56, %v1947_v32  ;;  %v2072_v40 = vperm.slane %v3729_v17, 5  ;;  %v2023_v43 = vmul.f32 %v2015_v42, %v3670_v21 }
 0x39d   : > { %2626 = vrcp.f32 %v1898_v28  ;;  %v2004_v39 = vadd.f32 %v1996_v63, %v1976_v51  ;;  %v2071_v61 = vperm.slane %v3733_v38, 5  ;;  %v2051_v49 = vmul.f32 %v2043_v34, %v3652_v55 }
 0x39e   : > { %2628 = vrcp.f32 %v1904_v8  ;;  %v2003_v19 = vadd.f32 %v1995_v16, %v1975_v29  ;;  %v2099_v3 = vperm.slane %v3733_v38, 6  ;;  %v2100_v6 = vperm.slane %v3729_v17, 6 }
 0x39f   : > { %v2032_v37 = vadd.f32 %v2024_v25, %v2004_v39  ;;  %2630 = vtanh.f32 %v1774_v33  ;;  %v2080_v50 = vmul.f32 %v2072_v40, %v3688_v11  ;;  %v2127_v26 = vperm.slane %v3733_v38, 7 }
 0x3a0   : > { %v2031_v1 = vadd.f32 %v2023_v43, %v2003_v19  ;;  %2632 = vtanh.f32 %v1760_v59  ;;  %v2079_v48 = vmul.f32 %v2071_v61, %v3688_v11  ;;  %v2107_v12 = vmul.f32 %v2099_v3, %v3702_v57 }
 0x3a1   : > { %v2060_v35 = vadd.f32 %v2052_v23, %v2032_v37  ;;  %v2108_v52 = vmul.f32 %v2100_v6, %v3702_v57  ;;  %v2128_v24 = vperm.slane %v3729_v17, 7  ;;  %v2135_v18 = vmul.f32 %v2127_v26, %v3714_v14 }
 0x3a2   : > { %v2059_v41 = vadd.f32 %v2051_v49, %v2031_v1 }
 0x3a3   : > { %v2627_v15 = vpop.eup %2626  ;;  %v2088_v46 = vadd.f32 %v2080_v50, %v2060_v35  ;;  %v2136_v32 = vmul.f32 %v2128_v24, %v3714_v14 }
 0x3a4   : > { %v2629_v45 = vpop.eup %2628  ;;  %v3754_v30 = vmul.f32 %v2627_v15, %v2615_v31  ;;  %v2087_v47 = vadd.f32 %v2079_v48, %v2059_v41 }
 0x3a5   : > { %v3757_v5 = vmul.f32 %v2629_v45, %v2617_v9  ;;  %v2631_v13 = vpop.eup %2630  ;;  %v2116_v8 = vadd.f32 %v2108_v52, %v2088_v46 }
 0x3a6   : > { %v1933_v27 = vperm.slane %v3754_v30, 0  ;;  %v1961_v38 = vperm.slane %v3754_v30, 1  ;;  %v1989_v60 = vperm.slane %v3754_v30, 2  ;;  %v2633_v28 = vpop.eup %2632  ;;  %v2115_v0 = vadd.f32 %v2107_v12, %v2087_v47 }
 0x3a7   : > { %v1934_v36 = vperm.slane %v3757_v5, 0  ;;  %v1962_v31 = vperm.slane %v3757_v5, 1  ;;  %v1990_v9 = vperm.slane %v3757_v5, 2  ;;  %v2018_v10 = vperm.slane %v3757_v5, 3 }
 0x3a8   : > { %v1941_v58 = vmul.f32 %v1933_v27, %v3634_v53  ;;  %v2046_v63 = vperm.slane %v3757_v5, 4  ;;  %v1969_v17 = vmul.f32 %v1961_v38, %v3660_v22  ;;  %v2017_v39 = vperm.slane %v3754_v30, 3 }
 0x3a9   : > { %v1942_v20 = vmul.f32 %v1934_v36, %v3634_v53  ;;  %v1970_v54 = vmul.f32 %v1962_v31, %v3660_v22  ;;  %v1998_v51 = vmul.f32 %v1990_v9, %v3640_v4  ;;  %v2026_v25 = vmul.f32 %v2018_v10, %v3670_v21 }
 0x3aa   : > { %v1949_v44 = vadd.f32 %v2633_v28, %v1941_v58  ;;  %v2074_v62 = vperm.slane %v3757_v5, 5  ;;  %v2045_v53 = vperm.slane %v3754_v30, 4  ;;  %v1997_v37 = vmul.f32 %v1989_v60, %v3640_v4 }
 0x3ab   : > { %v1950_v2 = vadd.f32 %v2631_v13, %v1942_v20  ;;  %v2143_v33 = vadd.f32 %v2135_v18, %v2115_v0  ;;  %v2054_v29 = vmul.f32 %v2046_v63, %v3652_v55  ;;  %v2102_v16 = vperm.slane %v3757_v5, 6 }
 0x3ac   : > { %v1977_v42 = vadd.f32 %v1969_v17, %v1949_v44  ;;  %v2144_v22 = vadd.f32 %v2136_v32, %v2116_v8  ;;  %v2025_v40 = vmul.f32 %v2017_v39, %v3670_v21  ;;  %v2073_v19 = vperm.slane %v3754_v30, 5 }
 0x3ad   : > { %v1978_v7 = vadd.f32 %v1970_v54, %v1950_v2  ;;  %v2082_v43 = vmul.f32 %v2074_v62, %v3688_v11  ;;  %v2101_v15 = vperm.slane %v3754_v30, 6  ;;  %v2151_v61 = vmax.f32 %v2143_v33, 0.0 }
 0x3ae   : > { %v2005_v23 = vadd.f32 %v1997_v37, %v1977_v42  ;;  %v2152_v59 = vmax.f32 %v2144_v22, 0.0  ;;  %v2053_v35 = vmul.f32 %v2045_v53, %v3652_v55  ;;  %v2130_v1 = vperm.slane %v3757_v5, 7 }
 0x3af   : > { %v2006_v56 = vadd.f32 %v1998_v51, %v1978_v7  ;;  %v2110_v49 = vmul.f32 %v2102_v16, %v3702_v57  ;;  %v2081_v50 = vmul.f32 %v2073_v19, %v3688_v11  ;;  %v2129_v41 = vperm.slane %v3754_v30, 7 }
 0x3b0   : > { %v2033_v4 = vadd.f32 %v2025_v40, %v2005_v23  ;;  %v2160_v3 = vmin.f32 %v2152_v59, 1.0  ;;  %v2159_v26 = vmin.f32 %v2151_v61, 1.0  ;;  %v2109_v31 = vmul.f32 %v2101_v15, %v3702_v57 }
 0x3b1   : > { %v2034_v34 = vadd.f32 %v2026_v25, %v2006_v56  ;;  %v2138_v55 = vmul.f32 %v2130_v1, %v3714_v14  ;;  %v2137_v48 = vmul.f32 %v2129_v41, %v3714_v14 }
 0x3b2   : > { %v2061_v6 = vadd.f32 %v2053_v35, %v2033_v4  ;;  %v2173_v36 = vrot.slane %v2160_v3, 4 }
 0x3b3   : > { %v2062_v45 = vadd.f32 %v2054_v29, %v2034_v34 }
 0x3b4   : > { %v2089_v46 = vadd.f32 %v2081_v50, %v2061_v6  ;;  %v2178_v5 = vsel %vm2175_vm1, %v2159_v26, %v2173_v36 }
 0x3b5   : > { %v2090_v21 = vadd.f32 %v2082_v43, %v2062_v45  ;;  %2186 = vst [vmem:[%s3725_s28 + $0x10] sm:$0x77] %v2178_v5 }
 0x3b6   : > { %v2117_v9 = vadd.f32 %v2109_v31, %v2089_v46 }
 0x3b7   : > { %v2118_v27 = vadd.f32 %v2110_v49, %v2090_v21 }
 0x3b8   : > { %v2145_v30 = vadd.f32 %v2137_v48, %v2117_v9 }
 0x3b9   : > { %v2146_v11 = vadd.f32 %v2138_v55, %v2118_v27 }
 0x3ba   : > { %v2153_v13 = vmax.f32 %v2145_v30, 0.0 }
 0x3bb   : > { %v2154_v57 = vmax.f32 %v2146_v11, 0.0 }
 0x3bc   : > { %v2161_v12 = vmin.f32 %v2153_v13, 1.0 }
 0x3bd   : > { %v2162_v20 = vmin.f32 %v2154_v57, 1.0 }
 0x3bf   : > { %v2174_v52 = vrot.slane %v2162_v20, 4 }
 0x3c1   : > { %v2179_v14 = vsel %vm2175_vm1, %v2161_v12, %v2174_v52 }
 0x3c2   : > { %2187 = vst [vmem:[%s3725_s28 + $0x18] sm:$0x77] %v2179_v14 }
 0x3c3   : > { %2691 = shalt.err (!%p2688_p4)
}
 0x3c4   : > { %2522 = dma.vmem_to_hbm [thread:$0]  (%p2822_p10), %s2203_s23, 512, %s2205_s22, %s2189_s25  }
 0x3c5 PF: > { %p2533_p5 = scmp.ge.s32.totalorder %s2730_s21, 2  ;;  %s2216_s14 = sand.u32 1, %s2718_s18  }
 0x3c6   : > { %s2217_s9 = scalar_lea.sflag [#allocation4], %s2216_s14 }
 0x3c7   : > { %p2529_p7 = pnand %p2533_p5, %p2826_p11 }
 0x3c9   : > { %p2530_p8 = pneg %p2529_p7 }
 0x3cb   : > { %2713 = dma.done.wait (%p2530_p8), %s2217_s9, 512  }
 0x3cc   : > { %2715 = vsyncadd (%p2530_p8), %s2217_s9, 4294966784  ;;  %p18_p9 = scmp.ge.s32.totalorder %s2798_s24, 5   ;;  %s3895_s18 = smov %s2722_s19 }
 0x3cd   : > { %s3896_s19 = smov %s2726_s20  ;;  %s3897_s20 = smov %s2810_s27 }
 0x3ce   : > { %s3898_s21 = smov %s2798_s24  ;;  %20 = sbr.rel (!%p18_p9) target bundleno = 5 (0x5), region = 85 }
 0x3d3   :  { %2223 = vsyncpa [#allocation3], 1 }
 0x3d4   :  { %2225 = vsyncpa [#allocation3 + $0x1], 1 }
 0x3d5   :  { %2226 = vsyncpa [#allocation4], 1 }
 0x3d6   :  { %2228 = vsyncpa [#allocation4 + $0x1], 1 }

</bundles_post_ra>
